<compile_context>
chip_gen: v6e
topology: v6e:2x2x1
jax: 0.10.0
libtpu: 0.0.40
codegen_flags: <defaults>
</compile_context>

<pallas_src>
import functools

import jax
import jax.numpy as jnp
from jax import lax
from jax.experimental import pallas as pl
from jax.experimental.pallas import tpu as pltpu


def _round_up(x, m):
    return ((x + m - 1) // m) * m


# ----------------------------------------------------------------------------
# Feature probe: single-buffered constant-index weight blocks
# (pipeline_mode=pl.Buffered(1)) save one full weight copy of VMEM — matters
# for large H on v7x's 64 MiB VMEM.  Fall back to default double buffering if
# the running JAX/Mosaic rejects it, so the kernel always runs.
# ----------------------------------------------------------------------------
def _probe_kernel(x_ref, o_ref):
    o_ref[...] = x_ref[...] + 1.0


def _probe_single_buffer_support():
    if not hasattr(pl, "Buffered"):
        return False
    try:
        spec = pl.BlockSpec((8, 128), lambda i: (0, 0),
                            pipeline_mode=pl.Buffered(buffer_count=1))
        out = pl.pallas_call(
            _probe_kernel,
            out_shape=jax.ShapeDtypeStruct((8, 128), jnp.float32),
            grid=(2,),
            in_specs=[spec],
            out_specs=pl.BlockSpec((8, 128), lambda i: (0, 0)),
        )(jnp.zeros((8, 128), jnp.float32))
        jax.block_until_ready(out)
        return True
    except Exception:
        return False


_SINGLE_BUFFER_WEIGHTS = _probe_single_buffer_support()


def _weight_spec(block_shape, index_map):
    """BlockSpec for a weight whose index_map is constant across the grid."""
    if _SINGLE_BUFFER_WEIGHTS:
        return pl.BlockSpec(block_shape, index_map,
                            pipeline_mode=pl.Buffered(buffer_count=1))
    return pl.BlockSpec(block_shape, index_map)


# ----------------------------------------------------------------------------
# Weight preparation: reorder PyTorch gate layout [i,f,g,o] -> [i,f,o,g]
# (sigmoid gates contiguous) and pad the per-gate stride H -> Hp = rup(H,128)
# so every in-kernel gate slice is lane-aligned.  Padding is exact: padded
# gate pre-activations are identically 0, so padded h/c state stays 0 and
# contributes nothing to the real columns.
# ----------------------------------------------------------------------------
def _prep_weights(w_ih, w_hh, b_ih, b_hh):
    four_h = w_ih.shape[0]
    h = four_h // 4
    hp = _round_up(h, 128)
    perm = jnp.concatenate([jnp.arange(0, 2 * h),
                            jnp.arange(3 * h, 4 * h),
                            jnp.arange(2 * h, 3 * h)])

    def reorder_pad_rows(w):
        w = w[perm].reshape(4, h, w.shape[-1])
        w = jnp.pad(w, ((0, 0), (0, hp - h), (0, 0)))
        return w.reshape(4 * hp, w.shape[-1])

    w_ih_p = reorder_pad_rows(w_ih)                     # (4Hp, E)
    w_hh_p = reorder_pad_rows(w_hh)                     # (4Hp, H)
    w_hh_p = jnp.pad(w_hh_p, ((0, 0), (0, hp - h)))     # (4Hp, Hp)
    bias = (b_ih + b_hh)[perm].reshape(4, h)
    bias = jnp.pad(bias, ((0, 0), (0, hp - h))).reshape(1, 4 * hp)
    return (jnp.transpose(w_ih_p),                      # (E, 4Hp)  f32
            jnp.transpose(w_hh_p),                      # (Hp, 4Hp) f32
            bias.astype(jnp.float32),                   # (1, 4Hp)  f32
            h, hp)


# ----------------------------------------------------------------------------
# Stage 1 (large vocab): all-timestep input projection  gates_x = X @ W_ih^T + b
# ----------------------------------------------------------------------------
def _input_proj_kernel(x_ref, w_ref, b_ref, o_ref):
    acc = jnp.dot(x_ref[...], w_ref[...], preferred_element_type=jnp.float32)
    o_ref[...] = (acc + b_ref[...]).astype(o_ref.dtype)


def _pick_row_tile(m, cap=512):
    # Largest divisor of M that is a multiple of 8, capped at `cap`; the full
    # dim (always a legal block) is the fallback for tiny/odd M.
    best = None
    for t in range(8, min(m, cap) + 1, 8):
        if m % t == 0:
            best = t
    return best if best is not None else m


def _input_projection(x2d, wih_t, bias, gx_dtype):
    """x2d (M, E) mxu dtype; wih_t (E, G) mxu dtype; bias (1, G) f32 -> (M, G)."""
    M, E = x2d.shape
    G = wih_t.shape[1]
    tile_m = _pick_row_tile(M)
    ib = x2d.dtype.itemsize
    gb = jnp.dtype(gx_dtype).itemsize
    vmem_needed = (2 * tile_m * E * ib          # x tile (double buffered)
                   + 2 * E * G * ib             # W_ih^T (x2 covers fallback)
                   + 2 * G * 4                  # bias
                   + 2 * tile_m * G * gb)       # out tile (double buffered)
    vmem_limit = min(int(vmem_needed * 1.5) + (1 << 20), 120 << 20)
    cost = pl.CostEstimate(
        flops=int(2 * M * E * G),
        transcendentals=0,
        bytes_accessed=int(M * E * ib + E * G * ib + G * 4 + M * G * gb))
    return pl.pallas_call(
        _input_proj_kernel,
        out_shape=jax.ShapeDtypeStruct((M, G), gx_dtype),
        grid_spec=pltpu.PrefetchScalarGridSpec(
            num_scalar_prefetch=0,
            grid=(M // tile_m,),
            in_specs=[
                pl.BlockSpec((tile_m, E), lambda i: (i, 0)),
                _weight_spec((E, G), lambda i: (0, 0)),     # resident W_ih^T
                pl.BlockSpec((1, G), lambda i: (0, 0)),      # fused bias
            ],
            out_specs=pl.BlockSpec((tile_m, G), lambda i: (i, 0)),
        ),
        compiler_params=pltpu.CompilerParams(
            dimension_semantics=("parallel",),
            vmem_limit_bytes=vmem_limit),
        cost_estimate=cost,
    )(x2d, wih_t, bias)


# ----------------------------------------------------------------------------
# Stage 2: serial LSTM recurrence over (batch tiles x time chunks).
# Per step only  h @ W_hh^T + gates_x[t]  remains on the critical path.
# ----------------------------------------------------------------------------
def _make_recurrent_kernel(ts, s_total, h_dim, hp, unroll, mxu_dtype):
    has_tail = (s_total % ts) != 0

    def kernel(gx_ref, whh_ref, h_out_ref, c_out_ref, h_sc, c_sc):
        t_blk = pl.program_id(1)

        @pl.when(t_blk == 0)
        def _():
            h_sc[...] = jnp.zeros_like(h_sc)
            c_sc[...] = jnp.zeros_like(c_sc)

        base = t_blk * ts

        def step(t, carry):
            h, c = carry
            gates = (gx_ref[t].astype(jnp.float32)
                     + jnp.dot(h.astype(mxu_dtype), whh_ref[...],
                               preferred_element_type=jnp.float32))
            # Gate layout [i | f | o | g], each lane-aligned with stride hp:
            # one wide sigmoid over 3*hp lanes, one tanh over hp lanes.
            sig = jax.nn.sigmoid(gates[:, :3 * hp])
            i_g = sig[:, 0 * hp:1 * hp]
            f_g = sig[:, 1 * hp:2 * hp]
            o_g = sig[:, 2 * hp:3 * hp]
            g_g = jnp.tanh(gates[:, 3 * hp:4 * hp])
            c_new = f_g * c + i_g * g_g
            h_new = o_g * jnp.tanh(c_new)
            if has_tail:
                valid = (base + t) < s_total
                h_new = jnp.where(valid, h_new, h)
                c_new = jnp.where(valid, c_new, c)
            return h_new, c_new

        h, c = lax.fori_loop(0, ts, step, (h_sc[...], c_sc[...]),
                             unroll=unroll)
        h_sc[...] = h
        c_sc[...] = c

        @pl.when(t_blk == pl.num_programs(1) - 1)
        def _():
            h_out_ref[0] = h[:, :h_dim].astype(h_out_ref.dtype)
            c_out_ref[0] = c[:, :h_dim].astype(c_out_ref.dtype)

    return kernel


def _pick_batch_tile(b):
    # >= 2 batch tiles let the "parallel" batch axis use both v7x TensorCores
    # during the serial stage; sub-batch tiles must be sublane multiples of 8.
    if b % 16 == 0:
        return b // 2
    return b


def _pick_time_chunk(s, tb, g, gx_bytes, max_chunk=64, vmem_budget=8 << 20):
    # Two pipeline buffers of the (TS, TB, 4*Hp) gates_x chunk must fit budget.
    per_step = 2 * tb * g * gx_bytes
    return int(max(1, min(s, max_chunk, vmem_budget // max(per_step, 1))))


# ----------------------------------------------------------------------------
# Encoder forward
# ----------------------------------------------------------------------------
def encoder_forward(src, emb_table, w_ih, w_hh, b_ih, b_hh,
                    *, compute_dtype=jnp.bfloat16, max_time_chunk=64):
    """src: (S, B) int32 token ids (time-major, like nn.LSTM default).
    PyTorch-layout weights: emb_table (V, E); w_ih (4H, E); w_hh (4H, H);
    b_ih, b_hh (4H,).  Returns (hidden, cell), each (1, B, H) float32.
    compute_dtype controls MXU operands / gates_x storage (bf16 default);
    accumulation and all gate math stay float32."""
    S, B = src.shape
    V, E = emb_table.shape
    mxu_dtype = jnp.dtype(compute_dtype)
    gx_dtype = mxu_dtype                         # gates_x HBM storage dtype
    gx_bytes = jnp.dtype(gx_dtype).itemsize

    wih_t, whh_t, bias, H, Hp = _prep_weights(w_ih, w_hh, b_ih, b_hh)
    G = 4 * Hp
    M = S * B
    src_flat = src.reshape(-1)

    # ---- Stage 1: gates_x[t,b] = W_ih @ emb[src[t,b]] + (b_ih + b_hh) -------
    if V <= M or V * G * gx_bytes <= (1 << 20):
        # Small vocab: fold embedding + projection + bias into one (V, 4Hp)
        # table; per-token work collapses to a row gather (exact: each output
        # row depends only on its own input row).
        fused = jnp.dot(emb_table.astype(jnp.float32), wih_t,
                        preferred_element_type=jnp.float32) + bias
        gates_x = jnp.take(fused.astype(gx_dtype), src_flat, axis=0)
    else:
        # Large vocab: XLA gather of (bf16) embedding rows, then a tiled,
        # MXU-friendly Pallas projection over all timesteps at once.
        # TODO(synk): fuse this gather into the projection kernel (scalar-
        # prefetched ids + in-kernel row gather) to drop the (S,B,E) HBM
        # round trip for the large-vocab path too.
        emb = jnp.take(emb_table.astype(mxu_dtype), src_flat, axis=0)
        gates_x = _input_projection(emb, wih_t.astype(mxu_dtype), bias, gx_dtype)
    gates_x = gates_x.reshape(S, B, G)

    # ---- Stage 2: chunked serial recurrence (batch-parallel x time-serial) --
    TB = _pick_batch_tile(B)
    TS = _pick_time_chunk(S, TB, G, gx_bytes, max_chunk=max_time_chunk)
    nb = B // TB
    nt = (S + TS - 1) // TS

    # Keep the unrolled live state (one (TB, 4Hp) f32 gates value per step)
    # within a few vregs so the latency-critical loop does not spill.
    step_bytes = TB * G * 4
    if step_bytes <= 16 * 1024:
        unroll = min(TS, 8)
    elif step_bytes <= 64 * 1024:
        unroll = 2
    else:
        unroll = 1

    whh_dev = whh_t.astype(mxu_dtype)
    wb = jnp.dtype(mxu_dtype).itemsize
    vmem_needed = (2 * TS * TB * G * gx_bytes   # gates_x chunk (double buffered)
                   + 2 * Hp * G * wb            # W_hh^T (x2 covers fallback)
                   + 2 * 2 * TB * H * 4         # h/c output blocks
                   + 2 * TB * Hp * 4)           # h/c scratch
    vmem_limit = min(int(vmem_needed * 1.5) + (1 << 20), 120 << 20)
    cost = pl.CostEstimate(
        flops=int(2 * S * B * Hp * G + 10 * S * B * Hp),
        transcendentals=int(5 * S * B * Hp),
        bytes_accessed=int(S * B * G * gx_bytes + Hp * G * wb + 2 * B * H * 4))

    kernel = _make_recurrent_kernel(TS, S, H, Hp, unroll, mxu_dtype)
    grid_spec = pltpu.PrefetchScalarGridSpec(
        num_scalar_prefetch=0,
        grid=(nb, nt),
        in_specs=[
            pl.BlockSpec((TS, TB, G), lambda b, t: (t, b, 0)),  # gates_x chunk
            _weight_spec((Hp, G), lambda b, t: (0, 0)),         # resident W_hh^T
        ],
        out_specs=[
            pl.BlockSpec((1, TB, H), lambda b, t: (0, b, 0)),   # hidden
            pl.BlockSpec((1, TB, H), lambda b, t: (0, b, 0)),   # cell
        ],
        scratch_shapes=[
            pltpu.VMEM((TB, Hp), jnp.float32),   # h carry
            pltpu.VMEM((TB, Hp), jnp.float32),   # c carry
        ],
    )

    hidden, cell = pl.pallas_call(
        kernel,
        out_shape=(jax.ShapeDtypeStruct((1, B, H), jnp.float32),
                   jax.ShapeDtypeStruct((1, B, H), jnp.float32)),
        grid_spec=grid_spec,
        compiler_params=pltpu.CompilerParams(
            dimension_semantics=("parallel", "arbitrary"),
            vmem_limit_bytes=vmem_limit),
        cost_estimate=cost,
    )(gates_x, whh_dev)
    return hidden, cell


# ----------------------------------------------------------------------------
# Pure-JAX reference (lax.scan LSTM) for correctness checking.
# ----------------------------------------------------------------------------
def encoder_forward_ref(src, emb_table, w_ih, w_hh, b_ih, b_hh):
    S, B = src.shape
    H = w_hh.shape[1]
    embedded = jnp.take(emb_table, src, axis=0).astype(jnp.float32)

    def step(carry, x):
        h, c = carry
        gates = x @ w_ih.T + h @ w_hh.T + b_ih + b_hh
        i_g = jax.nn.sigmoid(gates[:, 0 * H:1 * H])
        f_g = jax.nn.sigmoid(gates[:, 1 * H:2 * H])
        g_g = jnp.tanh(gates[:, 2 * H:3 * H])
        o_g = jax.nn.sigmoid(gates[:, 3 * H:4 * H])
        c_new = f_g * c + i_g * g_g
        h_new = o_g * jnp.tanh(c_new)
        return (h_new, c_new), h_new

    h0 = jnp.zeros((B, H), jnp.float32)
    c0 = jnp.zeros((B, H), jnp.float32)
    (h_f, c_f), _ = lax.scan(step, (h0, c0), embedded)
    return h_f[None], c_f[None]


if __name__ == "__main__":
    # --- Test 1: module-scale shapes, strict f32 check (fused-table path) ----
    input_size, embedding_size, hidden_size = 10, 16, 32
    seq_len, batch = 8, 2

    key = jax.random.PRNGKey(0)
    k_emb, k_ih, k_hh, k_bih, k_bhh, k_src = jax.random.split(key, 6)
    bound = 1.0 / jnp.sqrt(hidden_size)
    emb_table = jax.random.normal(k_emb, (input_size, embedding_size), jnp.float32)
    w_ih = jax.random.uniform(k_ih, (4 * hidden_size, embedding_size),
                              jnp.float32, -bound, bound)
    w_hh = jax.random.uniform(k_hh, (4 * hidden_size, hidden_size),
                              jnp.float32, -bound, bound)
    b_ih = jax.random.uniform(k_bih, (4 * hidden_size,), jnp.float32, -bound, bound)
    b_hh = jax.random.uniform(k_bhh, (4 * hidden_size,), jnp.float32, -bound, bound)
    src = jax.random.randint(k_src, (seq_len, batch), 0, input_size, jnp.int32)

    fwd_f32 = jax.jit(functools.partial(encoder_forward, compute_dtype=jnp.float32))
    hidden, cell = fwd_f32(src, emb_table, w_ih, w_hh, b_ih, b_hh)
    jax.block_until_ready((hidden, cell))
    h_ref, c_ref = encoder_forward_ref(src, emb_table, w_ih, w_hh, b_ih, b_hh)
    assert hidden.shape == (1, batch, hidden_size)
    assert cell.shape == (1, batch, hidden_size)
    assert jnp.allclose(hidden, h_ref, atol=1e-4), "hidden mismatch (f32)"
    assert jnp.allclose(cell, c_ref, atol=1e-4), "cell mismatch (f32)"

    # --- Test 2: bf16 MXU path, Pallas input-projection kernel (larger vocab),
    # batch tiling (2 tiles), padded gate stride, masked time-chunk tail. -----
    V2, E2, H2, S2, B2 = 3000, 32, 64, 23, 16
    k2 = jax.random.PRNGKey(1)
    k_emb2, k_ih2, k_hh2, k_bih2, k_bhh2, k_src2 = jax.random.split(k2, 6)
    bound2 = 1.0 / jnp.sqrt(H2)
    emb2 = jax.random.normal(k_emb2, (V2, E2), jnp.float32)
    w_ih2 = jax.random.uniform(k_ih2, (4 * H2, E2), jnp.float32, -bound2, bound2)
    w_hh2 = jax.random.uniform(k_hh2, (4 * H2, H2), jnp.float32, -bound2, bound2)
    b_ih2 = jax.random.uniform(k_bih2, (4 * H2,), jnp.float32, -bound2, bound2)
    b_hh2 = jax.random.uniform(k_bhh2, (4 * H2,), jnp.float32, -bound2, bound2)
    src2 = jax.random.randint(k_src2, (S2, B2), 0, V2, jnp.int32)

    fwd_bf16 = jax.jit(functools.partial(encoder_forward,
                                         compute_dtype=jnp.bfloat16,
                                         max_time_chunk=16))
    h2, c2 = fwd_bf16(src2, emb2, w_ih2, w_hh2, b_ih2, b_hh2)
    jax.block_until_ready((h2, c2))
    h2_ref, c2_ref = encoder_forward_ref(src2, emb2, w_ih2, w_hh2, b_ih2, b_hh2)
    assert h2.shape == (1, B2, H2) and c2.shape == (1, B2, H2)
    assert jnp.allclose(h2, h2_ref, rtol=3e-2, atol=3e-2), "hidden mismatch (bf16)"
    assert jnp.allclose(c2, c2_ref, rtol=3e-2, atol=3e-2), "cell mismatch (bf16)"

    # TODO(synk): dropout is identity here (p=0 / eval mode); no stochastic mask emitted.
    print("KERNEL_OK")
</pallas_src>

<mosaic_0001>
module attributes {stable_mosaic.version = 11 : i64} {
  func.func @_probe_kernel(%arg0: i32, %arg1: memref<8x128xf32, #tpu.memory_space<vmem>>, %arg2: memref<8x128xf32, #tpu.memory_space<vmem>>) attributes {dimension_semantics = [#tpu.dimension_semantics<arbitrary>], iteration_bounds = array<i64: 2>, scalar_prefetch = 0 : i64, scratch_operands = 0 : i64, tpu.core_type = #tpu.core_type<tc>, window_params = [{pipeline_mode = #tpu.pipeline_mode<synchronous>, transform_indices = @transform_0, window_bounds = array<i64: 8, 128>}, {pipeline_mode = #tpu.pipeline_mode<synchronous>, transform_indices = @transform_1, window_bounds = array<i64: 8, 128>}]} {
    %c0 = arith.constant 0 : index
    %c0_0 = arith.constant 0 : index
    %0 = vector.load %arg1[%c0, %c0_0] : memref<8x128xf32, #tpu.memory_space<vmem>>, vector<8x128xf32>
    %cst = arith.constant 1.000000e+00 : f32
    %1 = vector.broadcast %cst : f32 to vector<8x128xf32>
    %2 = arith.addf %0, %1 : vector<8x128xf32>
    %c0_1 = arith.constant 0 : index
    %c0_2 = arith.constant 0 : index
    %3 = vector.load %arg2[%c0_1, %c0_2] : memref<8x128xf32, #tpu.memory_space<vmem>>, vector<8x128xf32>
    tpu.vector_store %arg2[%c0_1, %c0_2], %2 {strides = array<i32>} : memref<8x128xf32, #tpu.memory_space<vmem>>, vector<8x128xf32>,
    return
  }
  func.func @transform_0(%arg0: i32) -> (i32, i32) {
    %c0_i32 = arith.constant 0 : i32
    %c0_i32_0 = arith.constant 0 : i32
    %c0_i32_1 = arith.constant 0 : i32
    return %c0_i32, %c0_i32_0 : i32, i32
  }
  func.func @transform_1(%arg0: i32) -> (i32, i32) {
    %c0_i32 = arith.constant 0 : i32
    %c0_i32_0 = arith.constant 0 : i32
    %c0_i32_1 = arith.constant 0 : i32
    return %c0_i32, %c0_i32_0 : i32, i32
  }
}

module attributes {stable_mosaic.version = 11 : i64} {
  func.func @kernel(%arg0: i32, %arg1: i32, %arg2: memref<8x2x512xf32, #tpu.memory_space<vmem>>, %arg3: memref<128x512xf32, #tpu.memory_space<vmem>>, %arg4: memref<1x2x32xf32, #tpu.memory_space<vmem>>, %arg5: memref<1x2x32xf32, #tpu.memory_space<vmem>>, %arg6: memref<2x128xf32, #tpu.memory_space<vmem>>, %arg7: memref<2x128xf32, #tpu.memory_space<vmem>>) attributes {dimension_semantics = [#tpu.dimension_semantics<parallel>, #tpu.dimension_semantics<arbitrary>], iteration_bounds = array<i64: 1, 1>, scalar_prefetch = 0 : i64, scratch_operands = 2 : i64, tpu.core_type = #tpu.core_type<tc>, window_params = [{transform_indices = @transform_0, window_bounds = array<i64: 8, 2, 512>}, {pipeline_mode = #tpu.pipeline_mode<synchronous>, transform_indices = @transform_1, window_bounds = array<i64: 128, 512>}, {transform_indices = @transform_2, window_bounds = array<i64: 1, 2, 32>}, {transform_indices = @transform_3, window_bounds = array<i64: 1, 2, 32>}]} {
    %c0_i32 = arith.constant 0 : i32
    %0 = arith.cmpi eq, %arg1, %c0_i32 : i32
    %1 = arith.extui %0 : i1 to i32
    %c0_i32_0 = arith.constant 0 : i32
    %2 = arith.cmpi ne, %1, %c0_i32_0 : i32
    scf.if %2 {
      %cst_58 = arith.constant 0.000000e+00 : f32
      %186 = vector.broadcast %cst_58 : f32 to vector<2x128xf32>
      %c0_59 = arith.constant 0 : index
      %c0_60 = arith.constant 0 : index
      %187 = vector.load %arg6[%c0_59, %c0_60] : memref<2x128xf32, #tpu.memory_space<vmem>>, vector<2x128xf32>
      tpu.vector_store %arg6[%c0_59, %c0_60], %186 {strides = array<i32>} : memref<2x128xf32, #tpu.memory_space<vmem>>, vector<2x128xf32>,
      %cst_61 = arith.constant 0.000000e+00 : f32
      %188 = vector.broadcast %cst_61 : f32 to vector<2x128xf32>
      %c0_62 = arith.constant 0 : index
      %c0_63 = arith.constant 0 : index
      %189 = vector.load %arg7[%c0_62, %c0_63] : memref<2x128xf32, #tpu.memory_space<vmem>>, vector<2x128xf32>
      tpu.vector_store %arg7[%c0_62, %c0_63], %188 {strides = array<i32>} : memref<2x128xf32, #tpu.memory_space<vmem>>, vector<2x128xf32>,
    } else {
    }
    %c0 = arith.constant 0 : index
    %c0_1 = arith.constant 0 : index
    %3 = vector.load %arg6[%c0, %c0_1] : memref<2x128xf32, #tpu.memory_space<vmem>>, vector<2x128xf32>
    %c0_2 = arith.constant 0 : index
    %c0_3 = arith.constant 0 : index
    %4 = vector.load %arg7[%c0_2, %c0_3] : memref<2x128xf32, #tpu.memory_space<vmem>>, vector<2x128xf32>
    %c0_i32_4 = arith.constant 0 : i32
    %5 = arith.index_cast %c0_i32_4 : i32 to index
    %c0_5 = arith.constant 0 : index
    %c0_6 = arith.constant 0 : index
    %6 = vector.load %arg2[%5, %c0_5, %c0_6] : memref<8x2x512xf32, #tpu.memory_space<vmem>>, vector<1x2x512xf32>
    %7 = vector.shape_cast %6 : vector<1x2x512xf32> to vector<2x512xf32>
    %c0_7 = arith.constant 0 : index
    %c0_8 = arith.constant 0 : index
    %8 = vector.load %arg3[%c0_7, %c0_8] : memref<128x512xf32, #tpu.memory_space<vmem>>, vector<128x512xf32>
    %cst = arith.constant dense<0.000000e+00> : vector<2x512xf32>
    %9 = tpu.matmul %3, %8, %cst {dimension_numbers = #tpu.dot_dimension_numbers<[1], [0], [0], [1], [0, 0, 1, 1], [], []>} : vector<2x128xf32>, vector<128x512xf32>, vector<2x512xf32> -> vector<2x512xf32>
    %10 = arith.addf %7, %9 : vector<2x512xf32>
    %11 = vector.extract_strided_slice %10 {offsets = [0, 0], sizes = [2, 384], strides = [1, 1]} : vector<2x512xf32> to vector<2x384xf32>
    %12 = arith.negf %11 : vector<2x384xf32>
    %13 = math.exp %12 : vector<2x384xf32>
    %cst_9 = arith.constant 1.000000e+00 : f32
    %14 = vector.broadcast %cst_9 : f32 to vector<2x384xf32>
    %15 = arith.addf %14, %13 : vector<2x384xf32>
    %16 = arith.divf %14, %15 : vector<2x384xf32>
    %17 = vector.extract_strided_slice %16 {offsets = [0, 0], sizes = [2, 128], strides = [1, 1]} : vector<2x384xf32> to vector<2x128xf32>
    %18 = vector.extract_strided_slice %16 {offsets = [0, 128], sizes = [2, 128], strides = [1, 1]} : vector<2x384xf32> to vector<2x128xf32>
    %19 = vector.extract_strided_slice %16 {offsets = [0, 256], sizes = [2, 128], strides = [1, 1]} : vector<2x384xf32> to vector<2x128xf32>
    %20 = vector.extract_strided_slice %10 {offsets = [0, 384], sizes = [2, 128], strides = [1, 1]} : vector<2x512xf32> to vector<2x128xf32>
    %21 = math.tanh %20 : vector<2x128xf32>
    %22 = arith.mulf %18, %4 : vector<2x128xf32>
    %23 = arith.mulf %17, %21 : vector<2x128xf32>
    %24 = arith.addf %22, %23 : vector<2x128xf32>
    %25 = math.tanh %24 : vector<2x128xf32>
    %26 = arith.mulf %19, %25 : vector<2x128xf32>
    %c1_i32 = arith.constant 1 : i32
    %27 = arith.index_cast %c1_i32 : i32 to index
    %c0_10 = arith.constant 0 : index
    %c0_11 = arith.constant 0 : index
    %28 = vector.load %arg2[%27, %c0_10, %c0_11] : memref<8x2x512xf32, #tpu.memory_space<vmem>>, vector<1x2x512xf32>
    %29 = vector.shape_cast %28 : vector<1x2x512xf32> to vector<2x512xf32>
    %c0_12 = arith.constant 0 : index
    %c0_13 = arith.constant 0 : index
    %30 = vector.load %arg3[%c0_12, %c0_13] : memref<128x512xf32, #tpu.memory_space<vmem>>, vector<128x512xf32>
    %cst_14 = arith.constant dense<0.000000e+00> : vector<2x512xf32>
    %31 = tpu.matmul %26, %30, %cst_14 {dimension_numbers = #tpu.dot_dimension_numbers<[1], [0], [0], [1], [0, 0, 1, 1], [], []>} : vector<2x128xf32>, vector<128x512xf32>, vector<2x512xf32> -> vector<2x512xf32>
    %32 = arith.addf %29, %31 : vector<2x512xf32>
    %33 = vector.extract_strided_slice %32 {offsets = [0, 0], sizes = [2, 384], strides = [1, 1]} : vector<2x512xf32> to vector<2x384xf32>
    %34 = arith.negf %33 : vector<2x384xf32>
    %35 = math.exp %34 : vector<2x384xf32>
    %cst_15 = arith.constant 1.000000e+00 : f32
    %36 = vector.broadcast %cst_15 : f32 to vector<2x384xf32>
    %37 = arith.addf %36, %35 : vector<2x384xf32>
    %38 = arith.divf %36, %37 : vector<2x384xf32>
    %39 = vector.extract_strided_slice %38 {offsets = [0, 0], sizes = [2, 128], strides = [1, 1]} : vector<2x384xf32> to vector<2x128xf32>
    %40 = vector.extract_strided_slice %38 {offsets = [0, 128], sizes = [2, 128], strides = [1, 1]} : vector<2x384xf32> to vector<2x128xf32>
    %41 = vector.extract_strided_slice %38 {offsets = [0, 256], sizes = [2, 128], strides = [1, 1]} : vector<2x384xf32> to vector<2x128xf32>
    %42 = vector.extract_strided_slice %32 {offsets = [0, 384], sizes = [2, 128], strides = [1, 1]} : vector<2x512xf32> to vector<2x128xf32>
    %43 = math.tanh %42 : vector<2x128xf32>
    %44 = arith.mulf %40, %24 : vector<2x128xf32>
    %45 = arith.mulf %39, %43 : vector<2x128xf32>
    %46 = arith.addf %44, %45 : vector<2x128xf32>
    %47 = math.tanh %46 : vector<2x128xf32>
    %48 = arith.mulf %41, %47 : vector<2x128xf32>
    %c2_i32 = arith.constant 2 : i32
    %49 = arith.index_cast %c2_i32 : i32 to index
    %c0_16 = arith.constant 0 : index
    %c0_17 = arith.constant 0 : index
    %50 = vector.load %arg2[%49, %c0_16, %c0_17] : memref<8x2x512xf32, #tpu.memory_space<vmem>>, vector<1x2x512xf32>
    %51 = vector.shape_cast %50 : vector<1x2x512xf32> to vector<2x512xf32>
    %c0_18 = arith.constant 0 : index
    %c0_19 = arith.constant 0 : index
    %52 = vector.load %arg3[%c0_18, %c0_19] : memref<128x512xf32, #tpu.memory_space<vmem>>, vector<128x512xf32>
    %cst_20 = arith.constant dense<0.000000e+00> : vector<2x512xf32>
    %53 = tpu.matmul %48, %52, %cst_20 {dimension_numbers = #tpu.dot_dimension_numbers<[1], [0], [0], [1], [0, 0, 1, 1], [], []>} : vector<2x128xf32>, vector<128x512xf32>, vector<2x512xf32> -> vector<2x512xf32>
    %54 = arith.addf %51, %53 : vector<2x512xf32>
    %55 = vector.extract_strided_slice %54 {offsets = [0, 0], sizes = [2, 384], strides = [1, 1]} : vector<2x512xf32> to vector<2x384xf32>
    %56 = arith.negf %55 : vector<2x384xf32>
    %57 = math.exp %56 : vector<2x384xf32>
    %cst_21 = arith.constant 1.000000e+00 : f32
    %58 = vector.broadcast %cst_21 : f32 to vector<2x384xf32>
    %59 = arith.addf %58, %57 : vector<2x384xf32>
    %60 = arith.divf %58, %59 : vector<2x384xf32>
    %61 = vector.extract_strided_slice %60 {offsets = [0, 0], sizes = [2, 128], strides = [1, 1]} : vector<2x384xf32> to vector<2x128xf32>
    %62 = vector.extract_strided_slice %60 {offsets = [0, 128], sizes = [2, 128], strides = [1, 1]} : vector<2x384xf32> to vector<2x128xf32>
    %63 = vector.extract_strided_slice %60 {offsets = [0, 256], sizes = [2, 128], strides = [1, 1]} : vector<2x384xf32> to vector<2x128xf32>
    %64 = vector.extract_strided_slice %54 {offsets = [0, 384], sizes = [2, 128], strides = [1, 1]} : vector<2x512xf32> to vector<2x128xf32>
    %65 = math.tanh %64 : vector<2x128xf32>
    %66 = arith.mulf %62, %46 : vector<2x128xf32>
    %67 = arith.mulf %61, %65 : vector<2x128xf32>
    %68 = arith.addf %66, %67 : vector<2x128xf32>
    %69 = math.tanh %68 : vector<2x128xf32>
    %70 = arith.mulf %63, %69 : vector<2x128xf32>
    %c3_i32 = arith.constant 3 : i32
    %71 = arith.index_cast %c3_i32 : i32 to index
    %c0_22 = arith.constant 0 : index
    %c0_23 = arith.constant 0 : index
    %72 = vector.load %arg2[%71, %c0_22, %c0_23] : memref<8x2x512xf32, #tpu.memory_space<vmem>>, vector<1x2x512xf32>
    %73 = vector.shape_cast %72 : vector<1x2x512xf32> to vector<2x512xf32>
    %c0_24 = arith.constant 0 : index
    %c0_25 = arith.constant 0 : index
    %74 = vector.load %arg3[%c0_24, %c0_25] : memref<128x512xf32, #tpu.memory_space<vmem>>, vector<128x512xf32>
    %cst_26 = arith.constant dense<0.000000e+00> : vector<2x512xf32>
    %75 = tpu.matmul %70, %74, %cst_26 {dimension_numbers = #tpu.dot_dimension_numbers<[1], [0], [0], [1], [0, 0, 1, 1], [], []>} : vector<2x128xf32>, vector<128x512xf32>, vector<2x512xf32> -> vector<2x512xf32>
    %76 = arith.addf %73, %75 : vector<2x512xf32>
    %77 = vector.extract_strided_slice %76 {offsets = [0, 0], sizes = [2, 384], strides = [1, 1]} : vector<2x512xf32> to vector<2x384xf32>
    %78 = arith.negf %77 : vector<2x384xf32>
    %79 = math.exp %78 : vector<2x384xf32>
    %cst_27 = arith.constant 1.000000e+00 : f32
    %80 = vector.broadcast %cst_27 : f32 to vector<2x384xf32>
    %81 = arith.addf %80, %79 : vector<2x384xf32>
    %82 = arith.divf %80, %81 : vector<2x384xf32>
    %83 = vector.extract_strided_slice %82 {offsets = [0, 0], sizes = [2, 128], strides = [1, 1]} : vector<2x384xf32> to vector<2x128xf32>
    %84 = vector.extract_strided_slice %82 {offsets = [0, 128], sizes = [2, 128], strides = [1, 1]} : vector<2x384xf32> to vector<2x128xf32>
    %85 = vector.extract_strided_slice %82 {offsets = [0, 256], sizes = [2, 128], strides = [1, 1]} : vector<2x384xf32> to vector<2x128xf32>
    %86 = vector.extract_strided_slice %76 {offsets = [0, 384], sizes = [2, 128], strides = [1, 1]} : vector<2x512xf32> to vector<2x128xf32>
    %87 = math.tanh %86 : vector<2x128xf32>
    %88 = arith.mulf %84, %68 : vector<2x128xf32>
    %89 = arith.mulf %83, %87 : vector<2x128xf32>
    %90 = arith.addf %88, %89 : vector<2x128xf32>
    %91 = math.tanh %90 : vector<2x128xf32>
    %92 = arith.mulf %85, %91 : vector<2x128xf32>
    %c4_i32 = arith.constant 4 : i32
    %93 = arith.index_cast %c4_i32 : i32 to index
    %c0_28 = arith.constant 0 : index
    %c0_29 = arith.constant 0 : index
    %94 = vector.load %arg2[%93, %c0_28, %c0_29] : memref<8x2x512xf32, #tpu.memory_space<vmem>>, vector<1x2x512xf32>
    %95 = vector.shape_cast %94 : vector<1x2x512xf32> to vector<2x512xf32>
    %c0_30 = arith.constant 0 : index
    %c0_31 = arith.constant 0 : index
    %96 = vector.load %arg3[%c0_30, %c0_31] : memref<128x512xf32, #tpu.memory_space<vmem>>, vector<128x512xf32>
    %cst_32 = arith.constant dense<0.000000e+00> : vector<2x512xf32>
    %97 = tpu.matmul %92, %96, %cst_32 {dimension_numbers = #tpu.dot_dimension_numbers<[1], [0], [0], [1], [0, 0, 1, 1], [], []>} : vector<2x128xf32>, vector<128x512xf32>, vector<2x512xf32> -> vector<2x512xf32>
    %98 = arith.addf %95, %97 : vector<2x512xf32>
    %99 = vector.extract_strided_slice %98 {offsets = [0, 0], sizes = [2, 384], strides = [1, 1]} : vector<2x512xf32> to vector<2x384xf32>
    %100 = arith.negf %99 : vector<2x384xf32>
    %101 = math.exp %100 : vector<2x384xf32>
    %cst_33 = arith.constant 1.000000e+00 : f32
    %102 = vector.broadcast %cst_33 : f32 to vector<2x384xf32>
    %103 = arith.addf %102, %101 : vector<2x384xf32>
    %104 = arith.divf %102, %103 : vector<2x384xf32>
    %105 = vector.extract_strided_slice %104 {offsets = [0, 0], sizes = [2, 128], strides = [1, 1]} : vector<2x384xf32> to vector<2x128xf32>
    %106 = vector.extract_strided_slice %104 {offsets = [0, 128], sizes = [2, 128], strides = [1, 1]} : vector<2x384xf32> to vector<2x128xf32>
    %107 = vector.extract_strided_slice %104 {offsets = [0, 256], sizes = [2, 128], strides = [1, 1]} : vector<2x384xf32> to vector<2x128xf32>
    %108 = vector.extract_strided_slice %98 {offsets = [0, 384], sizes = [2, 128], strides = [1, 1]} : vector<2x512xf32> to vector<2x128xf32>
    %109 = math.tanh %108 : vector<2x128xf32>
    %110 = arith.mulf %106, %90 : vector<2x128xf32>
    %111 = arith.mulf %105, %109 : vector<2x128xf32>
    %112 = arith.addf %110, %111 : vector<2x128xf32>
    %113 = math.tanh %112 : vector<2x128xf32>
    %114 = arith.mulf %107, %113 : vector<2x128xf32>
    %c5_i32 = arith.constant 5 : i32
    %115 = arith.index_cast %c5_i32 : i32 to index
    %c0_34 = arith.constant 0 : index
    %c0_35 = arith.constant 0 : index
    %116 = vector.load %arg2[%115, %c0_34, %c0_35] : memref<8x2x512xf32, #tpu.memory_space<vmem>>, vector<1x2x512xf32>
    %117 = vector.shape_cast %116 : vector<1x2x512xf32> to vector<2x512xf32>
    %c0_36 = arith.constant 0 : index
    %c0_37 = arith.constant 0 : index
    %118 = vector.load %arg3[%c0_36, %c0_37] : memref<128x512xf32, #tpu.memory_space<vmem>>, vector<128x512xf32>
    %cst_38 = arith.constant dense<0.000000e+00> : vector<2x512xf32>
    %119 = tpu.matmul %114, %118, %cst_38 {dimension_numbers = #tpu.dot_dimension_numbers<[1], [0], [0], [1], [0, 0, 1, 1], [], []>} : vector<2x128xf32>, vector<128x512xf32>, vector<2x512xf32> -> vector<2x512xf32>
    %120 = arith.addf %117, %119 : vector<2x512xf32>
    %121 = vector.extract_strided_slice %120 {offsets = [0, 0], sizes = [2, 384], strides = [1, 1]} : vector<2x512xf32> to vector<2x384xf32>
    %122 = arith.negf %121 : vector<2x384xf32>
    %123 = math.exp %122 : vector<2x384xf32>
    %cst_39 = arith.constant 1.000000e+00 : f32
    %124 = vector.broadcast %cst_39 : f32 to vector<2x384xf32>
    %125 = arith.addf %124, %123 : vector<2x384xf32>
    %126 = arith.divf %124, %125 : vector<2x384xf32>
    %127 = vector.extract_strided_slice %126 {offsets = [0, 0], sizes = [2, 128], strides = [1, 1]} : vector<2x384xf32> to vector<2x128xf32>
    %128 = vector.extract_strided_slice %126 {offsets = [0, 128], sizes = [2, 128], strides = [1, 1]} : vector<2x384xf32> to vector<2x128xf32>
    %129 = vector.extract_strided_slice %126 {offsets = [0, 256], sizes = [2, 128], strides = [1, 1]} : vector<2x384xf32> to vector<2x128xf32>
    %130 = vector.extract_strided_slice %120 {offsets = [0, 384], sizes = [2, 128], strides = [1, 1]} : vector<2x512xf32> to vector<2x128xf32>
    %131 = math.tanh %130 : vector<2x128xf32>
    %132 = arith.mulf %128, %112 : vector<2x128xf32>
    %133 = arith.mulf %127, %131 : vector<2x128xf32>
    %134 = arith.addf %132, %133 : vector<2x128xf32>
    %135 = math.tanh %134 : vector<2x128xf32>
    %136 = arith.mulf %129, %135 : vector<2x128xf32>
    %c6_i32 = arith.constant 6 : i32
    %137 = arith.index_cast %c6_i32 : i32 to index
    %c0_40 = arith.constant 0 : index
    %c0_41 = arith.constant 0 : index
    %138 = vector.load %arg2[%137, %c0_40, %c0_41] : memref<8x2x512xf32, #tpu.memory_space<vmem>>, vector<1x2x512xf32>
    %139 = vector.shape_cast %138 : vector<1x2x512xf32> to vector<2x512xf32>
    %c0_42 = arith.constant 0 : index
    %c0_43 = arith.constant 0 : index
    %140 = vector.load %arg3[%c0_42, %c0_43] : memref<128x512xf32, #tpu.memory_space<vmem>>, vector<128x512xf32>
    %cst_44 = arith.constant dense<0.000000e+00> : vector<2x512xf32>
    %141 = tpu.matmul %136, %140, %cst_44 {dimension_numbers = #tpu.dot_dimension_numbers<[1], [0], [0], [1], [0, 0, 1, 1], [], []>} : vector<2x128xf32>, vector<128x512xf32>, vector<2x512xf32> -> vector<2x512xf32>
    %142 = arith.addf %139, %141 : vector<2x512xf32>
    %143 = vector.extract_strided_slice %142 {offsets = [0, 0], sizes = [2, 384], strides = [1, 1]} : vector<2x512xf32> to vector<2x384xf32>
    %144 = arith.negf %143 : vector<2x384xf32>
    %145 = math.exp %144 : vector<2x384xf32>
    %cst_45 = arith.constant 1.000000e+00 : f32
    %146 = vector.broadcast %cst_45 : f32 to vector<2x384xf32>
    %147 = arith.addf %146, %145 : vector<2x384xf32>
    %148 = arith.divf %146, %147 : vector<2x384xf32>
    %149 = vector.extract_strided_slice %148 {offsets = [0, 0], sizes = [2, 128], strides = [1, 1]} : vector<2x384xf32> to vector<2x128xf32>
    %150 = vector.extract_strided_slice %148 {offsets = [0, 128], sizes = [2, 128], strides = [1, 1]} : vector<2x384xf32> to vector<2x128xf32>
    %151 = vector.extract_strided_slice %148 {offsets = [0, 256], sizes = [2, 128], strides = [1, 1]} : vector<2x384xf32> to vector<2x128xf32>
    %152 = vector.extract_strided_slice %142 {offsets = [0, 384], sizes = [2, 128], strides = [1, 1]} : vector<2x512xf32> to vector<2x128xf32>
    %153 = math.tanh %152 : vector<2x128xf32>
    %154 = arith.mulf %150, %134 : vector<2x128xf32>
    %155 = arith.mulf %149, %153 : vector<2x128xf32>
    %156 = arith.addf %154, %155 : vector<2x128xf32>
    %157 = math.tanh %156 : vector<2x128xf32>
    %158 = arith.mulf %151, %157 : vector<2x128xf32>
    %c7_i32 = arith.constant 7 : i32
    %159 = arith.index_cast %c7_i32 : i32 to index
    %c0_46 = arith.constant 0 : index
    %c0_47 = arith.constant 0 : index
    %160 = vector.load %arg2[%159, %c0_46, %c0_47] : memref<8x2x512xf32, #tpu.memory_space<vmem>>, vector<1x2x512xf32>
    %161 = vector.shape_cast %160 : vector<1x2x512xf32> to vector<2x512xf32>
    %c0_48 = arith.constant 0 : index
    %c0_49 = arith.constant 0 : index
    %162 = vector.load %arg3[%c0_48, %c0_49] : memref<128x512xf32, #tpu.memory_space<vmem>>, vector<128x512xf32>
    %cst_50 = arith.constant dense<0.000000e+00> : vector<2x512xf32>
    %163 = tpu.matmul %158, %162, %cst_50 {dimension_numbers = #tpu.dot_dimension_numbers<[1], [0], [0], [1], [0, 0, 1, 1], [], []>} : vector<2x128xf32>, vector<128x512xf32>, vector<2x512xf32> -> vector<2x512xf32>
    %164 = arith.addf %161, %163 : vector<2x512xf32>
    %165 = vector.extract_strided_slice %164 {offsets = [0, 0], sizes = [2, 384], strides = [1, 1]} : vector<2x512xf32> to vector<2x384xf32>
    %166 = arith.negf %165 : vector<2x384xf32>
    %167 = math.exp %166 : vector<2x384xf32>
    %cst_51 = arith.constant 1.000000e+00 : f32
    %168 = vector.broadcast %cst_51 : f32 to vector<2x384xf32>
    %169 = arith.addf %168, %167 : vector<2x384xf32>
    %170 = arith.divf %168, %169 : vector<2x384xf32>
    %171 = vector.extract_strided_slice %170 {offsets = [0, 0], sizes = [2, 128], strides = [1, 1]} : vector<2x384xf32> to vector<2x128xf32>
    %172 = vector.extract_strided_slice %170 {offsets = [0, 128], sizes = [2, 128], strides = [1, 1]} : vector<2x384xf32> to vector<2x128xf32>
    %173 = vector.extract_strided_slice %170 {offsets = [0, 256], sizes = [2, 128], strides = [1, 1]} : vector<2x384xf32> to vector<2x128xf32>
    %174 = vector.extract_strided_slice %164 {offsets = [0, 384], sizes = [2, 128], strides = [1, 1]} : vector<2x512xf32> to vector<2x128xf32>
    %175 = math.tanh %174 : vector<2x128xf32>
    %176 = arith.mulf %172, %156 : vector<2x128xf32>
    %177 = arith.mulf %171, %175 : vector<2x128xf32>
    %178 = arith.addf %176, %177 : vector<2x128xf32>
    %179 = math.tanh %178 : vector<2x128xf32>
    %180 = arith.mulf %173, %179 : vector<2x128xf32>
    %c8_i32 = arith.constant 8 : i32
    %c0_52 = arith.constant 0 : index
    %c0_53 = arith.constant 0 : index
    %181 = vector.load %arg6[%c0_52, %c0_53] : memref<2x128xf32, #tpu.memory_space<vmem>>, vector<2x128xf32>
    tpu.vector_store %arg6[%c0_52, %c0_53], %180 {strides = array<i32>} : memref<2x128xf32, #tpu.memory_space<vmem>>, vector<2x128xf32>,
    %c0_54 = arith.constant 0 : index
    %c0_55 = arith.constant 0 : index
    %182 = vector.load %arg7[%c0_54, %c0_55] : memref<2x128xf32, #tpu.memory_space<vmem>>, vector<2x128xf32>
    tpu.vector_store %arg7[%c0_54, %c0_55], %178 {strides = array<i32>} : memref<2x128xf32, #tpu.memory_space<vmem>>, vector<2x128xf32>,
    %c0_i32_56 = arith.constant 0 : i32
    %183 = arith.cmpi eq, %arg1, %c0_i32_56 : i32
    %184 = arith.extui %183 : i1 to i32
    %c0_i32_57 = arith.constant 0 : i32
    %185 = arith.cmpi ne, %184, %c0_i32_57 : i32
    scf.if %185 {
      %186 = vector.extract_strided_slice %180 {offsets = [0, 0], sizes = [2, 32], strides = [1, 1]} : vector<2x128xf32> to vector<2x32xf32>
      %c0_58 = arith.constant 0 : index
      %c0_59 = arith.constant 0 : index
      %c0_60 = arith.constant 0 : index
      %187 = vector.load %arg4[%c0_58, %c0_59, %c0_60] : memref<1x2x32xf32, #tpu.memory_space<vmem>>, vector<1x2x32xf32>
      %188 = vector.shape_cast %187 : vector<1x2x32xf32> to vector<2x32xf32>
      %189 = vector.shape_cast %186 : vector<2x32xf32> to vector<1x2x32xf32>
      tpu.vector_store %arg4[%c0_58, %c0_59, %c0_60], %189 {strides = array<i32>} : memref<1x2x32xf32, #tpu.memory_space<vmem>>, vector<1x2x32xf32>,
      %190 = vector.extract_strided_slice %178 {offsets = [0, 0], sizes = [2, 32], strides = [1, 1]} : vector<2x128xf32> to vector<2x32xf32>
      %c0_61 = arith.constant 0 : index
      %c0_62 = arith.constant 0 : index
      %c0_63 = arith.constant 0 : index
      %191 = vector.load %arg5[%c0_61, %c0_62, %c0_63] : memref<1x2x32xf32, #tpu.memory_space<vmem>>, vector<1x2x32xf32>
      %192 = vector.shape_cast %191 : vector<1x2x32xf32> to vector<2x32xf32>
      %193 = vector.shape_cast %190 : vector<2x32xf32> to vector<1x2x32xf32>
      tpu.vector_store %arg5[%c0_61, %c0_62, %c0_63], %193 {strides = array<i32>} : memref<1x2x32xf32, #tpu.memory_space<vmem>>, vector<1x2x32xf32>,
    } else {
    }
    return
  }
  func.func @transform_0(%arg0: i32, %arg1: i32) -> (i32, i32, i32) {
    %c0_i32 = arith.constant 0 : i32
    %c0_i32_0 = arith.constant 0 : i32
    return %arg1, %arg0, %c0_i32 : i32, i32, i32
  }
  func.func @transform_1(%arg0: i32, %arg1: i32) -> (i32, i32) {
    %c0_i32 = arith.constant 0 : i32
    %c0_i32_0 = arith.constant 0 : i32
    %c0_i32_1 = arith.constant 0 : i32
    return %c0_i32, %c0_i32_0 : i32, i32
  }
  func.func @transform_2(%arg0: i32, %arg1: i32) -> (i32, i32, i32) {
    %c0_i32 = arith.constant 0 : i32
    %c0_i32_0 = arith.constant 0 : i32
    %c0_i32_1 = arith.constant 0 : i32
    return %c0_i32, %arg0, %c0_i32_0 : i32, i32, i32
  }
  func.func @transform_3(%arg0: i32, %arg1: i32) -> (i32, i32, i32) {
    %c0_i32 = arith.constant 0 : i32
    %c0_i32_0 = arith.constant 0 : i32
    %c0_i32_1 = arith.constant 0 : i32
    return %c0_i32, %arg0, %c0_i32_0 : i32, i32, i32
  }
}

</mosaic_0001>

<bundles_post_ra>
// kernel: tpu_custom_call.1
= control target key start
LH: loop header
LB: loop body
LE: loop exit
PB: predicated region body
PF: predicated region fallthrough
CT: control target
= control target key end

     0   :  { %6 = vsyncpa [#allocation3], 0  ;;  %s305_s0 = inlined_call_operand.hbm [shape: f32[8,128], index: 0, kind: input, shape index: {}]   ;;  %s306_s1 = inlined_call_operand.hbm [shape: f32[8,128], index: 1, kind: output, shape index: {}]  }
   0x1   :  { %7 = vsyncpa [#allocation4], 0  ;;  %s258_s6 = smov 0  }
   0x2 LB: > { %s145_s7 = sadd.s32 4294967295, %s244_s6   ;;  %p146_p0 = scmp.ge.s32.totalorder %s244_s6, 1  ;;  %s244_s6 = sphi %s258_s6, %s13_s6  }
   0x3   : > { %p60_p1 = scmp.lt.s32.totalorder %s244_s6, 3  ;;  %p270_p3 = scmp.eq.s32.totalorder %s145_s7, 0 }
   0x4   : > { %s246_s10 = smov [#allocation2]  }
   0x5   : > { %p266_p2 = pnand %p146_p0, %p60_p1  ;;  %s73_s11 = sshll.u32 %s246_s10, 4  ;;  %s74_s11 = int_to_ptr.vmem [resolvable:$true] %s73_s11 }
   0x6   : > { %s191_s12 = scalar_lea.vmem %s74_s11, 128  ;;  %p199_p10 = scmp.lt.s32.totalorder %s74_s11, %s74_s11 }
   0x7   : > { %p162_p4 = pneg %p266_p2  ;;  %p192_p7 = scmp.ne.s32.totalorder %s74_s11, %s191_s12 }
   0x8   : > { %p200_p11 = scmp.lt.s32.totalorder %s191_s12, %s191_s12 }
   0x9   : > { %p163_p5 = pnand %p270_p3, %p162_p4 }
   0xa   : > { %p201_p12 = por %p200_p11, %p199_p10 }
   0xb   : > { %p182_p6 = pneg %p163_p5 }
   0xd   : > { %p194_p8 = pnand %p192_p7, %p182_p6 }
   0xf   : > { %p195_p9 = pneg %p194_p8 }
  0x11   : > { %p202_p13 = pnand %p201_p12, %p195_p9 }
  0x13   : > { %205 = shalt.err (!%p202_p13)
}
  0x14   : > { %165 = dma.hbm_to_vmem [thread:$0]  (!%p163_p5), %s305_s0, 128, %s74_s11, [#allocation3]  }
  0x15   : > { %86 = sbr.rel (%p266_p2) target bundleno = 42 (0x2a), region = 24 }
  0x1a   : > { %235 = dma.done.wait (%p270_p3), [#allocation3], 128  }
  0x1b   : > { %237 = vsyncadd (%p270_p3), [#allocation3], 4294967168  ;;  %s247_s15 = smov [#allocation5]   ;;  %v96_v0 = vld [vmem:[#allocation2] sm:$0xff]  ;;  %p287_p0 = scmp.eq.s32.totalorder %s145_s7, 1 }
  0x1c   : > { %s106_s16 = sshll.u32 %s247_s15, 4  ;;  %v97_v1 = vadd.f32 1.0, %v96_v0  ;;  %s107_s16 = int_to_ptr.vmem [resolvable:$true] %s106_s16 }
  0x1d   : > { %s206_s18 = scalar_lea.vmem %s107_s16, 128  ;;  %p213_p5 = scmp.lt.s32.totalorder %s107_s16, %s107_s16 }
  0x1e   : > { %98 = vst [vmem:[#allocation5] sm:$0xff] %v97_v1  ;;  %p207_p1 = scmp.ne.s32.totalorder %s107_s16, %s206_s18  ;;  %p214_p6 = scmp.lt.s32.totalorder %s206_s18, %s206_s18 }
  0x20   : > { %p208_p2 = pnand %p207_p1, %p287_p0  ;;  %p215_p7 = por %p214_p6, %p213_p5 }
  0x22   : > { %p209_p4 = pneg %p208_p2 }
  0x24   : > { %p216_p3 = pnand %p215_p7, %p209_p4 }
  0x26   : > { %219 = shalt.err (!%p216_p3)
}
  0x27   : > { %159 = dma.vmem_to_hbm [thread:$0]  (%p287_p0), %s107_s16, 128, %s306_s1, [#allocation4]  }
  0x28   : > { %239 = dma.done.wait (%p287_p0), [#allocation4], 128  }
  0x29   : > { %241 = vsyncadd (%p287_p0), [#allocation4], 4294967168 }
  0x2a PF: > { %s13_s6 = sadd.s32 1, %s244_s6  }
  0x2b   : > { %p10_p8 = scmp.ge.s32.totalorder %s13_s6, 4  }
  0x2d   :  { %12 = sbr.rel (!%p10_p8) target bundleno = 2 (0x2), region = 53 }
  0x32   :  { %119 = vsyncpa [#allocation3], 1 }
  0x33   :  { %121 = vsyncpa [#allocation3 + $0x1], 1 }
  0x34   :  { %122 = vsyncpa [#allocation4], 1 }
  0x35   :  { %124 = vsyncpa [#allocation4 + $0x1], 1 }

// kernel: encoder_forward.1
= control target key start
LH: loop header
LB: loop body
LE: loop exit
PB: predicated region body
PF: predicated region fallthrough
CT: control target
= control target key end

     0   :  { %9 = vsyncpa [#allocation5], 0  ;;  %v3081_v6 = vmov 0.0   ;;  %s3077_s0 = inlined_call_operand.vmem [shape: f32[8,2,512], index: 0, kind: input, shape index: {}]   ;;  %s3078_s1 = inlined_call_operand.vmem [shape: f32[128,512], index: 1, kind: input, shape index: {}]   ;;  %s3079_s2 = inlined_call_operand.hbm [shape: f32[1,2,32], index: 2, kind: output, shape index: {0}]   ;;  %s3080_s3 = inlined_call_operand.hbm [shape: f32[1,2,32], index: 3, kind: output, shape index: {1}]  }
   0x1   :  { %v1836_v0 = vld [vmem:[%s3078_s1 + $0x1e8] sm:$0xff]  ;;  %v1841_v1 = vld [vmem:[%s3078_s1 + $0x1f8] sm:$0xff]  ;;  %v1846_v2 = vld [vmem:[%s3078_s1 + $0x1e0] sm:$0xff]  ;;  %19 = vst [vmem:[#allocation2] sm:$0x3] %v3081_v6 }
   0x2   :  { %3143 = vst [vmem:[#allocation10_spill] sm:$0xff] %v1836_v0  ;;  %3144 = vst [vmem:[#allocation11_spill] sm:$0xff] %v1841_v1  ;;  %88 = vmatprep.subr.mxu0 %v1836_v0  ;;  %159 = vmatprep.subr.mxu1 %v1841_v1  ;;  %v1853_v3 = vld [vmem:[%s3078_s1 + $0x1f0] sm:$0xff]  ;;  %v1858_v4 = vld [vmem:[%s3078_s1 + $0x1c8] sm:$0xff] }
   0x3   :  { %v1863_v5 = vld [vmem:[%s3078_s1 + $0x1d8] sm:$0xff]  ;;  %20 = vst [vmem:[#allocation3] sm:$0x3] %v3081_v6  ;;  %89 = vmatpush1.msra.mxu0 %v1846_v2  ;;  %160 = vmatpush1.msra.mxu1 %v1853_v3  ;;  %v1872_v7 = vld [vmem:[%s3078_s1 + $0x1c0] sm:$0xff]  ;;  %v1877_v8 = vld [vmem:[%s3078_s1 + $0x1d0] sm:$0xff] }
   0x4   :  { %v1882_v9 = vld [vmem:[%s3078_s1 + $0x1a8] sm:$0xff]  ;;  %90 = vmatprep.subr.mxu0 %v1858_v4  ;;  %161 = vmatprep.subr.mxu1 %v1863_v5  ;;  %v1889_v10 = vld [vmem:[%s3078_s1 + $0x1b8] sm:$0xff]  ;;  %v1894_v11 = vld [vmem:[%s3078_s1 + $0x1a0] sm:$0xff] }
   0x5   :  { %v1899_v12 = vld [vmem:[%s3078_s1 + $0x1b0] sm:$0xff]  ;;  %91 = vmatpush1.msra.mxu0 %v1872_v7  ;;  %162 = vmatpush1.msra.mxu1 %v1877_v8  ;;  %v1906_v13 = vld [vmem:[%s3078_s1 + $0x188] sm:$0xff]  ;;  %v1911_v14 = vld [vmem:[%s3078_s1 + $0x198] sm:$0xff] }
   0x6   :  { %92 = vmatprep.subr.mxu0 %v1882_v9  ;;  %163 = vmatprep.subr.mxu1 %v1889_v10  ;;  %v1918_v15 = vld [vmem:[%s3078_s1 + $0x180] sm:$0xff]  ;;  %v1923_v16 = vld [vmem:[%s3078_s1 + $0x190] sm:$0xff]  ;;  %v1930_v17 = vld [vmem:[%s3078_s1 + $0x168] sm:$0xff] }
   0x7   :  { %93 = vmatpush1.msra.mxu0 %v1894_v11  ;;  %164 = vmatpush1.msra.mxu1 %v1899_v12  ;;  %v1935_v18 = vld [vmem:[%s3078_s1 + $0x178] sm:$0xff]  ;;  %v1942_v19 = vld [vmem:[%s3078_s1 + $0x160] sm:$0xff]  ;;  %v1947_v20 = vld [vmem:[%s3078_s1 + $0x170] sm:$0xff] }
   0x8   :  { %94 = vmatprep.subr.mxu0 %v1906_v13  ;;  %165 = vmatprep.subr.mxu1 %v1911_v14  ;;  %v1954_v21 = vld [vmem:[%s3078_s1 + $0x148] sm:$0xff]  ;;  %v1959_v22 = vld [vmem:[%s3078_s1 + $0x158] sm:$0xff]  ;;  %v1966_v23 = vld [vmem:[%s3078_s1 + $0x140] sm:$0xff] }
   0x9   :  { %95 = vmatpush1.msra.mxu0 %v1918_v15  ;;  %166 = vmatpush1.msra.mxu1 %v1923_v16  ;;  %v1971_v24 = vld [vmem:[%s3078_s1 + $0x150] sm:$0xff]  ;;  %v1978_v25 = vld [vmem:[%s3078_s1 + $0x128] sm:$0xff]  ;;  %v1983_v26 = vld [vmem:[%s3078_s1 + $0x138] sm:$0xff] }
   0xa   :  { %96 = vmatprep.subr.mxu0 %v1930_v17  ;;  %167 = vmatprep.subr.mxu1 %v1935_v18  ;;  %v1990_v27 = vld [vmem:[%s3078_s1 + $0x120] sm:$0xff]  ;;  %v1995_v28 = vld [vmem:[%s3078_s1 + $0x130] sm:$0xff]  ;;  %v2002_v29 = vld [vmem:[%s3078_s1 + $0x108] sm:$0xff] }
   0xb   :  { %97 = vmatpush1.msra.mxu0 %v1942_v19  ;;  %168 = vmatpush1.msra.mxu1 %v1947_v20  ;;  %v2007_v30 = vld [vmem:[%s3078_s1 + $0x118] sm:$0xff]  ;;  %v2014_v31 = vld [vmem:[%s3078_s1 + $0x100] sm:$0xff]  ;;  %v2019_v32 = vld [vmem:[%s3078_s1 + $0x110] sm:$0xff] }
   0xc   :  { %98 = vmatprep.subr.mxu0 %v1954_v21  ;;  %169 = vmatprep.subr.mxu1 %v1959_v22  ;;  %v2026_v33 = vld [vmem:[%s3078_s1 + $0xe8] sm:$0xff]  ;;  %v2031_v34 = vld [vmem:[%s3078_s1 + $0xf8] sm:$0xff]  ;;  %v2038_v35 = vld [vmem:[%s3078_s1 + $0xe0] sm:$0xff] }
   0xd   :  { %99 = vmatpush1.msra.mxu0 %v1966_v23  ;;  %170 = vmatpush1.msra.mxu1 %v1971_v24  ;;  %v2043_v36 = vld [vmem:[%s3078_s1 + $0xf0] sm:$0xff]  ;;  %v2050_v37 = vld [vmem:[%s3078_s1 + $0xc8] sm:$0xff]  ;;  %v2055_v38 = vld [vmem:[%s3078_s1 + $0xd8] sm:$0xff] }
   0xe   :  { %100 = vmatprep.subr.mxu0 %v1978_v25  ;;  %171 = vmatprep.subr.mxu1 %v1983_v26  ;;  %v2062_v39 = vld [vmem:[%s3078_s1 + $0xc0] sm:$0xff]  ;;  %v2067_v40 = vld [vmem:[%s3078_s1 + $0xd0] sm:$0xff]  ;;  %v2074_v41 = vld [vmem:[%s3078_s1 + $0xa8] sm:$0xff] }
   0xf   :  { %101 = vmatpush1.msra.mxu0 %v1990_v27  ;;  %172 = vmatpush1.msra.mxu1 %v1995_v28  ;;  %v2079_v42 = vld [vmem:[%s3078_s1 + $0xb8] sm:$0xff]  ;;  %v2086_v43 = vld [vmem:[%s3078_s1 + $0xa0] sm:$0xff]  ;;  %v2091_v44 = vld [vmem:[%s3078_s1 + $0xb0] sm:$0xff] }
  0x10   :  { %102 = vmatprep.subr.mxu0 %v2002_v29  ;;  %173 = vmatprep.subr.mxu1 %v2007_v30  ;;  %v2098_v45 = vld [vmem:[%s3078_s1 + $0x88] sm:$0xff]  ;;  %v2103_v46 = vld [vmem:[%s3078_s1 + $0x98] sm:$0xff]  ;;  %v2110_v47 = vld [vmem:[%s3078_s1 + $0x80] sm:$0xff] }
  0x11   :  { %103 = vmatpush1.msra.mxu0 %v2014_v31  ;;  %174 = vmatpush1.msra.mxu1 %v2019_v32  ;;  %3145 = vst [vmem:[#allocation12_spill] sm:$0xff] %v2110_v47  ;;  %v2115_v48 = vld [vmem:[%s3078_s1 + $0x90] sm:$0xff] }
  0x12   :  { %104 = vmatprep.subr.mxu0 %v2026_v33  ;;  %175 = vmatprep.subr.mxu1 %v2031_v34 }
  0x13   :  { %105 = vmatpush1.msra.mxu0 %v2038_v35  ;;  %176 = vmatpush1.msra.mxu1 %v2043_v36 }
  0x14   :  { %106 = vmatprep.subr.mxu0 %v2050_v37  ;;  %177 = vmatprep.subr.mxu1 %v2055_v38 }
  0x15   :  { %107 = vmatpush1.msra.mxu0 %v2062_v39  ;;  %178 = vmatpush1.msra.mxu1 %v2067_v40 }
  0x16   :  { %108 = vmatprep.subr.mxu0 %v2074_v41  ;;  %179 = vmatprep.subr.mxu1 %v2079_v42 }
  0x17   :  { %10 = vsyncpa [#allocation7], 0  ;;  %109 = vmatpush1.msra.mxu0 %v2086_v43  ;;  %180 = vmatpush1.msra.mxu1 %v2091_v44  ;;  %v2122_v49 = vld [vmem:[%s3078_s1 + $0x68] sm:$0xff]  ;;  %v2127_v50 = vld [vmem:[%s3078_s1 + $0x78] sm:$0xff]  ;;  %s1811_s13 = smov [#allocation6]   ;;  %vm1587_vm0 = vcmask 254976  }
  0x18   :  { %3146 = vst [vmem:[#allocation13_spill] sm:$0xff] %v2122_v49  ;;  %3147 = vst [vmem:[#allocation14_spill] sm:$0xff] %v2127_v50  ;;  %110 = vmatprep.subr.mxu0 %v2098_v45  ;;  %181 = vmatprep.subr.mxu1 %v2103_v46  ;;  %v2134_v51 = vld [vmem:[%s3078_s1 + $0x60] sm:$0xff]  ;;  %v2139_v52 = vld [vmem:[%s3078_s1 + $0x70] sm:$0xff]  ;;  %s1606_s14 = sshll.u32 %s1811_s13, 4  ;;  %s1607_s14 = int_to_ptr.vmem [resolvable:$true] %s1606_s14 }
  0x19   :  { %3148 = vst [vmem:[#allocation15_spill] sm:$0xff] %v2134_v51  ;;  %3149 = vst [vmem:[#allocation16_spill] sm:$0xff] %v2139_v52  ;;  %111 = vmatpush1.msra.mxu0 %v2110_v47  ;;  %182 = vmatpush1.msra.mxu1 %v2115_v48  ;;  %v2146_v53 = vld [vmem:[%s3078_s1 + $0x48] sm:$0xff]  ;;  %v2151_v54 = vld [vmem:[%s3078_s1 + $0x58] sm:$0xff]  ;;  %p1770_p1 = scmp.lt.s32.totalorder %s1607_s14, %s1607_s14 }
  0x1a   :  { %3150 = vst [vmem:[#allocation17_spill] sm:$0xff] %v2146_v53  ;;  %3151 = vst [vmem:[#allocation18_spill] sm:$0xff] %v2151_v54  ;;  %112 = vmatprep.subr.mxu0 %v2122_v49  ;;  %183 = vmatprep.subr.mxu1 %v2127_v50  ;;  %v2158_v55 = vld [vmem:[%s3078_s1 + $0x40] sm:$0xff]  ;;  %v2163_v56 = vld [vmem:[%s3078_s1 + $0x50] sm:$0xff] }
  0x1b   :  { %3152 = vst [vmem:[#allocation19_spill] sm:$0xff] %v2158_v55  ;;  %3153 = vst [vmem:[#allocation20_spill] sm:$0xff] %v2163_v56  ;;  %113 = vmatpush1.msra.mxu0 %v2134_v51  ;;  %184 = vmatpush1.msra.mxu1 %v2139_v52  ;;  %v2170_v57 = vld [vmem:[%s3078_s1 + $0x28] sm:$0xff]  ;;  %v2175_v58 = vld [vmem:[%s3078_s1 + $0x38] sm:$0xff] }
  0x1c   :  { %3154 = vst [vmem:[#allocation21_spill] sm:$0xff] %v2170_v57  ;;  %3155 = vst [vmem:[#allocation22_spill] sm:$0xff] %v2175_v58  ;;  %114 = vmatprep.subr.mxu0 %v2146_v53  ;;  %185 = vmatprep.subr.mxu1 %v2151_v54  ;;  %v2182_v59 = vld [vmem:[%s3078_s1 + $0x20] sm:$0xff]  ;;  %v2187_v60 = vld [vmem:[%s3078_s1 + $0x30] sm:$0xff] }
  0x1d   :  { %3156 = vst [vmem:[#allocation23_spill] sm:$0xff] %v2182_v59  ;;  %3157 = vst [vmem:[#allocation24_spill] sm:$0xff] %v2187_v60  ;;  %115 = vmatpush1.msra.mxu0 %v2158_v55  ;;  %186 = vmatpush1.msra.mxu1 %v2163_v56  ;;  %v2194_v61 = vld [vmem:[%s3078_s1 + $0x8] sm:$0xff]  ;;  %v2199_v62 = vld [vmem:[%s3078_s1 + $0x18] sm:$0xff] }
  0x1e   :  { %3158 = vst [vmem:[#allocation25_spill] sm:$0xff] %v2194_v61  ;;  %3159 = vst [vmem:[#allocation26_spill] sm:$0xff] %v2199_v62  ;;  %116 = vmatprep.subr.mxu0 %v2170_v57  ;;  %187 = vmatprep.subr.mxu1 %v2175_v58  ;;  %v2206_v63 = vld [vmem:[%s3078_s1] sm:$0xff]  ;;  %v2213_v6 = vld [vmem:[%s3078_s1 + $0x10] sm:$0xff]  ;;  %v3162_v58 = vmov 0.0  }
  0x1f   :  { %3160 = vst [vmem:[#allocation27_spill] sm:$0xff] %v2206_v63  ;;  %117 = vmatpush1.msra.mxu0 %v2182_v59  ;;  %188 = vmatpush1.msra.mxu1 %v2187_v60  ;;  %3161 = vst [vmem:[#allocation28_spill] sm:$0xff] %v2213_v6  ;;  %v21_v57 = vld [vmem:[#allocation2] sm:$0x3] }
  0x20   :  { %118 = vmatprep.subr.mxu0 %v2194_v61  ;;  %189 = vmatprep.subr.mxu1 %v2199_v62 }
  0x21   :  { %119 = vmatpush1.msra.mxu0 %v2206_v63  ;;  %152 = vmatprep.mubr.f32.mxu0 %v3162_v58 }
  0x22   :  { %190 = vmatpush1.msra.mxu1 %v2213_v6  ;;  %223 = vmatprep.mubr.f32.mxu1 %v3162_v58 }
  0x23   :  { %153 = vmatmul.mubr.f32.vlgmr.msra.gmra.mxu0 %v21_v57  ;;  %224 = vmatmul.mubr.f32.vlgmr.msra.gmra.mxu1 %v21_v57  ;;  %v3163_v57 = vld [vmem:[#allocation21_spill] sm:$0xff] }
  0x24   :  { %275 = vmatprep.subr.mxu0 %v1836_v0  ;;  %346 = vmatprep.subr.mxu1 %v1841_v1 }
  0x25   :  { %276 = vmatpush1.msra.mxu0 %v1846_v2  ;;  %347 = vmatpush1.msra.mxu1 %v1853_v3 }
  0x26   :  { %277 = vmatprep.subr.mxu0 %v1858_v4  ;;  %348 = vmatprep.subr.mxu1 %v1863_v5 }
  0x27   :  { %278 = vmatpush1.msra.mxu0 %v1872_v7  ;;  %349 = vmatpush1.msra.mxu1 %v1877_v8 }
  0x28   :  { %279 = vmatprep.subr.mxu0 %v1882_v9  ;;  %350 = vmatprep.subr.mxu1 %v1889_v10 }
  0x29   :  { %280 = vmatpush1.msra.mxu0 %v1894_v11  ;;  %351 = vmatpush1.msra.mxu1 %v1899_v12 }
  0x2a   :  { %281 = vmatprep.subr.mxu0 %v1906_v13  ;;  %352 = vmatprep.subr.mxu1 %v1911_v14 }
  0x2b   :  { %282 = vmatpush1.msra.mxu0 %v1918_v15  ;;  %353 = vmatpush1.msra.mxu1 %v1923_v16 }
  0x2c   :  { %283 = vmatprep.subr.mxu0 %v1930_v17  ;;  %354 = vmatprep.subr.mxu1 %v1935_v18 }
  0x2d   :  { %284 = vmatpush1.msra.mxu0 %v1942_v19  ;;  %355 = vmatpush1.msra.mxu1 %v1947_v20 }
  0x2e   :  { %285 = vmatprep.subr.mxu0 %v1954_v21  ;;  %356 = vmatprep.subr.mxu1 %v1959_v22 }
  0x2f   :  { %286 = vmatpush1.msra.mxu0 %v1966_v23  ;;  %357 = vmatpush1.msra.mxu1 %v1971_v24 }
  0x30   :  { %287 = vmatprep.subr.mxu0 %v1978_v25  ;;  %358 = vmatprep.subr.mxu1 %v1983_v26 }
  0x31   :  { %288 = vmatpush1.msra.mxu0 %v1990_v27  ;;  %359 = vmatpush1.msra.mxu1 %v1995_v28 }
  0x32   :  { %289 = vmatprep.subr.mxu0 %v2002_v29  ;;  %360 = vmatprep.subr.mxu1 %v2007_v30 }
  0x33   :  { %290 = vmatpush1.msra.mxu0 %v2014_v31  ;;  %361 = vmatpush1.msra.mxu1 %v2019_v32 }
  0x34   :  { %291 = vmatprep.subr.mxu0 %v2026_v33  ;;  %362 = vmatprep.subr.mxu1 %v2031_v34 }
  0x35   :  { %292 = vmatpush1.msra.mxu0 %v2038_v35  ;;  %363 = vmatpush1.msra.mxu1 %v2043_v36 }
  0x36   :  { %293 = vmatprep.subr.mxu0 %v2050_v37  ;;  %364 = vmatprep.subr.mxu1 %v2055_v38 }
  0x37   :  { %294 = vmatpush1.msra.mxu0 %v2062_v39  ;;  %365 = vmatpush1.msra.mxu1 %v2067_v40 }
  0x38   :  { %295 = vmatprep.subr.mxu0 %v2074_v41  ;;  %366 = vmatprep.subr.mxu1 %v2079_v42 }
  0x39   :  { %296 = vmatpush1.msra.mxu0 %v2086_v43  ;;  %367 = vmatpush1.msra.mxu1 %v2091_v44 }
  0x3a   :  { %297 = vmatprep.subr.mxu0 %v2098_v45  ;;  %368 = vmatprep.subr.mxu1 %v2103_v46 }
  0x3b   :  { %298 = vmatpush1.msra.mxu0 %v2110_v47  ;;  %369 = vmatpush1.msra.mxu1 %v2115_v48  ;;  %v3164_v47 = vld [vmem:[#allocation22_spill] sm:$0xff] }
  0x3c   :  { %299 = vmatprep.subr.mxu0 %v2122_v49  ;;  %370 = vmatprep.subr.mxu1 %v2127_v50 }
  0x3d   :  { %300 = vmatpush1.msra.mxu0 %v2134_v51  ;;  %371 = vmatpush1.msra.mxu1 %v2139_v52 }
  0x3e   :  { %301 = vmatprep.subr.mxu0 %v2146_v53  ;;  %372 = vmatprep.subr.mxu1 %v2151_v54 }
  0x3f   :  { %302 = vmatpush1.msra.mxu0 %v2158_v55  ;;  %373 = vmatpush1.msra.mxu1 %v2163_v56 }
  0x40   :  { %303 = vmatprep.subr.mxu0 %v3163_v57  ;;  %374 = vmatprep.subr.mxu1 %v3164_v47  ;;  %v1810_v47 = vmov 1983009808   ;;  %v239_v57 = vlaneseq }
  0x41   :  { %304 = vmatpush1.msra.mxu0 %v2182_v59  ;;  %375 = vmatpush1.msra.mxu1 %v2187_v60  ;;  %v237_v59 = vunpack.c.l.s4 %v1810_v47 }
  0x42   :  { %305 = vmatprep.subr.mxu0 %v2194_v61  ;;  %376 = vmatprep.subr.mxu1 %v2199_v62  ;;  %v240_v56 = vshrl.u32 %v239_v57, 7 }
  0x43   :  { %306 = vmatpush1.msra.mxu0 %v2206_v63  ;;  %339 = vmatprep.mubr.f32.mxu0 %v3162_v58  ;;  %v238_v60 = vunpack.c.0.s8 %v237_v59 }
  0x44   :  { %377 = vmatpush1.msra.mxu1 %v2213_v6  ;;  %410 = vmatprep.mubr.f32.mxu1 %v3162_v58 }
  0x45   :  { %462 = vmatprep.subr.mxu0 %v1836_v0  ;;  %533 = vmatprep.subr.mxu1 %v1841_v1  ;;  %v2289_v62 = vsub.s32 %v238_v60, %v240_v56  ;;  %v23_v1 = vld [vmem:[%s3077_s0] sm:$0xff] }
  0x47   :  { %3165 = vst [vmem:[#allocation29_spill] sm:$0xff] %v2289_v62 }
  0xe3   :  { %v154_v61 = vpop.f32.mrf.mxu0  ;;  %v225_v55 = vpop.f32.mrf.mxu1 }
  0xe5   :  { %v156_v63 = vpop.f32.mrf.mxu0  ;;  %v227_v54 = vpop.f32.mrf.mxu1 }
  0xe6   :  { %v234_v53 = vcombine.low %v154_v61, %v156_v63  ;;  %v235_v52 = vcombine.low %v225_v55, %v227_v54  ;;  %v22_v61 = vld [vmem:[#allocation3] sm:$0x3] }
  0xe8   :  { %v242_v6 = vrot.slane %v234_v53, %v2289_v62  ;;  %v249_v58 = vrot.slane %v235_v52, %v2289_v62 }
  0xea   :  { %v250_v47 = vcombine.low %v242_v6, %v249_v58  ;;  %v3168_v58 = vld [vmem:[#allocation16_spill] sm:$0xff] }
  0xec   :  { %v252_v0 = vadd.f32 %v250_v47, %v23_v1  ;;  %v3170_v47 = vld [vmem:[#allocation18_spill] sm:$0xff] }
  0xee   :  { %v1618_v59 = vmul.f32 -1.442695, %v252_v0  ;;  %v260_v56 = vrot.slane %v252_v0, 6  ;;  %v3166_v0 = vld [vmem:[#allocation12_spill] sm:$0xff] }
  0xf0   :  { %1637 = vpow2.f32 %v1618_v59  ;;  %v3171_v59 = vld [vmem:[#allocation19_spill] sm:$0xff] }
  0xfd   :  { %v1638_v57 = vpop.eup %1637 }
  0xfe   :  { %v256_v51 = vadd.f32 1.0, %v1638_v57  ;;  %v3172_v57 = vld [vmem:[#allocation20_spill] sm:$0xff] }
 0x100   :  { %1639 = vrcp.f32 %v256_v51  ;;  %v3167_v51 = vld [vmem:[#allocation15_spill] sm:$0xff] }
 0x101   :  { %1641 = vtanh.f32 %v260_v56  ;;  %v3173_v56 = vld [vmem:[#allocation21_spill] sm:$0xff] }
 0x10d   :  { %v1640_v60 = vpop.eup %1639 }
 0x10e   :  { %v264_v54 = vrot.slane %v1640_v60, 2  ;;  %v1642_v55 = vpop.eup %1641  ;;  %v270_v62 = vrot.slane %v1640_v60, 4 }
 0x10f   :  { %v267_v53 = vmul.f32 %v1642_v55, %v1640_v60  ;;  %v3174_v60 = vld [vmem:[#allocation22_spill] sm:$0xff]  ;;  %v3177_v55 = vld [vmem:[#allocation25_spill] sm:$0xff] }
 0x110   :  { %v266_v63 = vmul.f32 %v264_v54, %v22_v61  ;;  %v3175_v61 = vld [vmem:[#allocation23_spill] sm:$0xff]  ;;  %v3176_v54 = vld [vmem:[#allocation24_spill] sm:$0xff] }
 0x112   :  { %v2296_v52 = vadd.f32 %v267_v53, %v266_v63  ;;  %v3178_v53 = vld [vmem:[#allocation26_spill] sm:$0xff]  ;;  %v3179_v63 = vld [vmem:[#allocation27_spill] sm:$0xff] }
 0x114   :  { %1643 = vtanh.f32 %v2296_v52 }
 0x121   :  { %v1644_v6 = vpop.eup %1643 }
 0x122   :  { %v272_v1 = vmul.f32 %v1644_v6, %v270_v62  ;;  %v3169_v62 = vld [vmem:[#allocation17_spill] sm:$0xff]  ;;  %v3180_v6 = vmov 0.0  }
 0x124   :  { %340 = vmatmul.mubr.f32.vlgmr.msra.gmra.mxu0 %v272_v1  ;;  %411 = vmatmul.mubr.f32.vlgmr.msra.gmra.mxu1 %v272_v1  ;;  %v3181_v1 = vld [vmem:[#allocation28_spill] sm:$0xff] }
 0x125   :  { %463 = vmatpush1.msra.mxu0 %v1846_v2  ;;  %534 = vmatpush1.msra.mxu1 %v1853_v3 }
 0x126   :  { %464 = vmatprep.subr.mxu0 %v1858_v4  ;;  %535 = vmatprep.subr.mxu1 %v1863_v5 }
 0x127   :  { %465 = vmatpush1.msra.mxu0 %v1872_v7  ;;  %536 = vmatpush1.msra.mxu1 %v1877_v8 }
 0x128   :  { %466 = vmatprep.subr.mxu0 %v1882_v9  ;;  %537 = vmatprep.subr.mxu1 %v1889_v10 }
 0x129   :  { %467 = vmatpush1.msra.mxu0 %v1894_v11  ;;  %538 = vmatpush1.msra.mxu1 %v1899_v12 }
 0x12a   :  { %468 = vmatprep.subr.mxu0 %v1906_v13  ;;  %539 = vmatprep.subr.mxu1 %v1911_v14 }
 0x12b   :  { %469 = vmatpush1.msra.mxu0 %v1918_v15  ;;  %540 = vmatpush1.msra.mxu1 %v1923_v16 }
 0x12c   :  { %470 = vmatprep.subr.mxu0 %v1930_v17  ;;  %541 = vmatprep.subr.mxu1 %v1935_v18 }
 0x12d   :  { %471 = vmatpush1.msra.mxu0 %v1942_v19  ;;  %542 = vmatpush1.msra.mxu1 %v1947_v20 }
 0x12e   :  { %472 = vmatprep.subr.mxu0 %v1954_v21  ;;  %543 = vmatprep.subr.mxu1 %v1959_v22 }
 0x12f   :  { %473 = vmatpush1.msra.mxu0 %v1966_v23  ;;  %544 = vmatpush1.msra.mxu1 %v1971_v24 }
 0x130   :  { %474 = vmatprep.subr.mxu0 %v1978_v25  ;;  %545 = vmatprep.subr.mxu1 %v1983_v26 }
 0x131   :  { %475 = vmatpush1.msra.mxu0 %v1990_v27  ;;  %546 = vmatpush1.msra.mxu1 %v1995_v28 }
 0x132   :  { %476 = vmatprep.subr.mxu0 %v2002_v29  ;;  %547 = vmatprep.subr.mxu1 %v2007_v30 }
 0x133   :  { %477 = vmatpush1.msra.mxu0 %v2014_v31  ;;  %548 = vmatpush1.msra.mxu1 %v2019_v32 }
 0x134   :  { %478 = vmatprep.subr.mxu0 %v2026_v33  ;;  %549 = vmatprep.subr.mxu1 %v2031_v34 }
 0x135   :  { %479 = vmatpush1.msra.mxu0 %v2038_v35  ;;  %550 = vmatpush1.msra.mxu1 %v2043_v36 }
 0x136   :  { %480 = vmatprep.subr.mxu0 %v2050_v37  ;;  %551 = vmatprep.subr.mxu1 %v2055_v38 }
 0x137   :  { %481 = vmatpush1.msra.mxu0 %v2062_v39  ;;  %552 = vmatpush1.msra.mxu1 %v2067_v40 }
 0x138   :  { %482 = vmatprep.subr.mxu0 %v2074_v41  ;;  %553 = vmatprep.subr.mxu1 %v2079_v42 }
 0x139   :  { %483 = vmatpush1.msra.mxu0 %v2086_v43  ;;  %554 = vmatpush1.msra.mxu1 %v2091_v44 }
 0x13a   :  { %484 = vmatprep.subr.mxu0 %v2098_v45  ;;  %555 = vmatprep.subr.mxu1 %v2103_v46 }
 0x13b   :  { %485 = vmatpush1.msra.mxu0 %v3166_v0  ;;  %556 = vmatpush1.msra.mxu1 %v2115_v48 }
 0x13c   :  { %486 = vmatprep.subr.mxu0 %v2122_v49  ;;  %557 = vmatprep.subr.mxu1 %v2127_v50 }
 0x13d   :  { %487 = vmatpush1.msra.mxu0 %v3167_v51  ;;  %558 = vmatpush1.msra.mxu1 %v3168_v58 }
 0x13e   :  { %488 = vmatprep.subr.mxu0 %v3169_v62  ;;  %559 = vmatprep.subr.mxu1 %v3170_v47  ;;  %v3184_v62 = vld [vmem:[#allocation29_spill] sm:$0xff] }
 0x13f   :  { %489 = vmatpush1.msra.mxu0 %v3171_v59  ;;  %560 = vmatpush1.msra.mxu1 %v3172_v57  ;;  %v3182_v57 = vld [vmem:[#allocation10_spill] sm:$0xff] }
 0x140   :  { %490 = vmatprep.subr.mxu0 %v3173_v56  ;;  %561 = vmatprep.subr.mxu1 %v3174_v60  ;;  %v3183_v56 = vld [vmem:[#allocation11_spill] sm:$0xff] }
 0x141   :  { %491 = vmatpush1.msra.mxu0 %v3175_v61  ;;  %562 = vmatpush1.msra.mxu1 %v3176_v54 }
 0x142   :  { %492 = vmatprep.subr.mxu0 %v3177_v55  ;;  %563 = vmatprep.subr.mxu1 %v3178_v53 }
 0x143   :  { %493 = vmatpush1.msra.mxu0 %v3179_v63  ;;  %526 = vmatprep.mubr.f32.mxu0 %v3180_v6 }
 0x144   :  { %564 = vmatpush1.msra.mxu1 %v3181_v1  ;;  %597 = vmatprep.mubr.f32.mxu1 %v3180_v6  ;;  %v1619_v1 = vld [vmem:[%s3077_s0 + $0x8] sm:$0xff] }
 0x145   :  { %649 = vmatprep.subr.mxu0 %v3182_v57  ;;  %720 = vmatprep.subr.mxu1 %v3183_v56 }
 0x1e4   :  { %v341_v60 = vpop.f32.mrf.mxu0  ;;  %v412_v61 = vpop.f32.mrf.mxu1 }
 0x1e6   :  { %v343_v59 = vpop.f32.mrf.mxu0  ;;  %v414_v54 = vpop.f32.mrf.mxu1 }
 0x1e7   :  { %v421_v47 = vcombine.low %v341_v60, %v343_v59  ;;  %v422_v55 = vcombine.low %v412_v61, %v414_v54 }
 0x1e9   :  { %v429_v53 = vrot.slane %v421_v47, %v3184_v62  ;;  %v436_v63 = vrot.slane %v422_v55, %v3184_v62 }
 0x1eb   :  { %v437_v58 = vcombine.low %v429_v53, %v436_v63  ;;  %v3191_v63 = vld [vmem:[#allocation19_spill] sm:$0xff] }
 0x1ed   :  { %v439_v6 = vadd.f32 %v1619_v1, %v437_v58  ;;  %v3193_v1 = vld [vmem:[#allocation21_spill] sm:$0xff] }
 0x1ef   :  { %v1620_v51 = vmul.f32 -1.442695, %v439_v6  ;;  %v447_v50 = vrot.slane %v439_v6, 6  ;;  %v3192_v6 = vld [vmem:[#allocation20_spill] sm:$0xff] }
 0x1f1   :  { %1645 = vpow2.f32 %v1620_v51  ;;  %v3188_v51 = vld [vmem:[#allocation16_spill] sm:$0xff] }
 0x1fe   :  { %v1646_v57 = vpop.eup %1645 }
 0x1ff   :  { %v443_v56 = vadd.f32 1.0, %v1646_v57  ;;  %v3189_v57 = vld [vmem:[#allocation17_spill] sm:$0xff] }
 0x201   :  { %1647 = vrcp.f32 %v443_v56  ;;  %v3190_v56 = vld [vmem:[#allocation18_spill] sm:$0xff] }
 0x202   :  { %1649 = vtanh.f32 %v447_v50  ;;  %v3186_v50 = vld [vmem:[#allocation14_spill] sm:$0xff] }
 0x20e   :  { %v1648_v49 = vpop.eup %1647 }
 0x20f   :  { %v451_v59 = vrot.slane %v1648_v49, 2  ;;  %v1650_v60 = vpop.eup %1649  ;;  %v457_v55 = vrot.slane %v1648_v49, 4 }
 0x210   :  { %v454_v61 = vmul.f32 %v1650_v60, %v1648_v49  ;;  %v3185_v49 = vld [vmem:[#allocation13_spill] sm:$0xff]  ;;  %v3195_v60 = vld [vmem:[#allocation23_spill] sm:$0xff] }
 0x211   :  { %v453_v47 = vmul.f32 %v451_v59, %v2296_v52  ;;  %v3187_v52 = vld [vmem:[#allocation15_spill] sm:$0xff]  ;;  %v3194_v59 = vld [vmem:[#allocation22_spill] sm:$0xff] }
 0x213   :  { %v2371_v54 = vadd.f32 %v454_v61, %v453_v47  ;;  %v3196_v61 = vld [vmem:[#allocation24_spill] sm:$0xff]  ;;  %v3197_v47 = vld [vmem:[#allocation25_spill] sm:$0xff] }
 0x215   :  { %1651 = vtanh.f32 %v2371_v54 }
 0x222   :  { %v1652_v53 = vpop.eup %1651 }
 0x223   :  { %v459_v58 = vmul.f32 %v1652_v53, %v457_v55  ;;  %v3198_v55 = vld [vmem:[#allocation26_spill] sm:$0xff]  ;;  %v3199_v53 = vld [vmem:[#allocation27_spill] sm:$0xff] }
 0x225   :  { %527 = vmatmul.mubr.f32.vlgmr.msra.gmra.mxu0 %v459_v58  ;;  %598 = vmatmul.mubr.f32.vlgmr.msra.gmra.mxu1 %v459_v58  ;;  %v3200_v58 = vmov 0.0  }
 0x226   :  { %650 = vmatpush1.msra.mxu0 %v1846_v2  ;;  %721 = vmatpush1.msra.mxu1 %v1853_v3 }
 0x227   :  { %651 = vmatprep.subr.mxu0 %v1858_v4  ;;  %722 = vmatprep.subr.mxu1 %v1863_v5 }
 0x228   :  { %652 = vmatpush1.msra.mxu0 %v1872_v7  ;;  %723 = vmatpush1.msra.mxu1 %v1877_v8 }
 0x229   :  { %653 = vmatprep.subr.mxu0 %v1882_v9  ;;  %724 = vmatprep.subr.mxu1 %v1889_v10 }
 0x22a   :  { %654 = vmatpush1.msra.mxu0 %v1894_v11  ;;  %725 = vmatpush1.msra.mxu1 %v1899_v12 }
 0x22b   :  { %655 = vmatprep.subr.mxu0 %v1906_v13  ;;  %726 = vmatprep.subr.mxu1 %v1911_v14 }
 0x22c   :  { %656 = vmatpush1.msra.mxu0 %v1918_v15  ;;  %727 = vmatpush1.msra.mxu1 %v1923_v16 }
 0x22d   :  { %657 = vmatprep.subr.mxu0 %v1930_v17  ;;  %728 = vmatprep.subr.mxu1 %v1935_v18 }
 0x22e   :  { %658 = vmatpush1.msra.mxu0 %v1942_v19  ;;  %729 = vmatpush1.msra.mxu1 %v1947_v20 }
 0x22f   :  { %659 = vmatprep.subr.mxu0 %v1954_v21  ;;  %730 = vmatprep.subr.mxu1 %v1959_v22 }
 0x230   :  { %660 = vmatpush1.msra.mxu0 %v1966_v23  ;;  %731 = vmatpush1.msra.mxu1 %v1971_v24 }
 0x231   :  { %661 = vmatprep.subr.mxu0 %v1978_v25  ;;  %732 = vmatprep.subr.mxu1 %v1983_v26 }
 0x232   :  { %662 = vmatpush1.msra.mxu0 %v1990_v27  ;;  %733 = vmatpush1.msra.mxu1 %v1995_v28 }
 0x233   :  { %663 = vmatprep.subr.mxu0 %v2002_v29  ;;  %734 = vmatprep.subr.mxu1 %v2007_v30 }
 0x234   :  { %664 = vmatpush1.msra.mxu0 %v2014_v31  ;;  %735 = vmatpush1.msra.mxu1 %v2019_v32 }
 0x235   :  { %665 = vmatprep.subr.mxu0 %v2026_v33  ;;  %736 = vmatprep.subr.mxu1 %v2031_v34 }
 0x236   :  { %666 = vmatpush1.msra.mxu0 %v2038_v35  ;;  %737 = vmatpush1.msra.mxu1 %v2043_v36 }
 0x237   :  { %667 = vmatprep.subr.mxu0 %v2050_v37  ;;  %738 = vmatprep.subr.mxu1 %v2055_v38 }
 0x238   :  { %668 = vmatpush1.msra.mxu0 %v2062_v39  ;;  %739 = vmatpush1.msra.mxu1 %v2067_v40 }
 0x239   :  { %669 = vmatprep.subr.mxu0 %v2074_v41  ;;  %740 = vmatprep.subr.mxu1 %v2079_v42 }
 0x23a   :  { %670 = vmatpush1.msra.mxu0 %v2086_v43  ;;  %741 = vmatpush1.msra.mxu1 %v2091_v44 }
 0x23b   :  { %671 = vmatprep.subr.mxu0 %v2098_v45  ;;  %742 = vmatprep.subr.mxu1 %v2103_v46 }
 0x23c   :  { %672 = vmatpush1.msra.mxu0 %v3166_v0  ;;  %743 = vmatpush1.msra.mxu1 %v2115_v48 }
 0x23d   :  { %673 = vmatprep.subr.mxu0 %v3185_v49  ;;  %744 = vmatprep.subr.mxu1 %v3186_v50 }
 0x23e   :  { %674 = vmatpush1.msra.mxu0 %v3187_v52  ;;  %745 = vmatpush1.msra.mxu1 %v3188_v51 }
 0x23f   :  { %675 = vmatprep.subr.mxu0 %v3189_v57  ;;  %746 = vmatprep.subr.mxu1 %v3190_v56  ;;  %v3201_v56 = vld [vmem:[#allocation28_spill] sm:$0xff] }
 0x240   :  { %676 = vmatpush1.msra.mxu0 %v3191_v63  ;;  %747 = vmatpush1.msra.mxu1 %v3192_v6  ;;  %v3202_v6 = vld [vmem:[#allocation10_spill] sm:$0xff] }
 0x241   :  { %677 = vmatprep.subr.mxu0 %v3193_v1  ;;  %748 = vmatprep.subr.mxu1 %v3194_v59  ;;  %v3203_v1 = vld [vmem:[#allocation11_spill] sm:$0xff] }
 0x242   :  { %678 = vmatpush1.msra.mxu0 %v3195_v60  ;;  %749 = vmatpush1.msra.mxu1 %v3196_v61 }
 0x243   :  { %679 = vmatprep.subr.mxu0 %v3197_v47  ;;  %750 = vmatprep.subr.mxu1 %v3198_v55 }
 0x244   :  { %680 = vmatpush1.msra.mxu0 %v3199_v53  ;;  %713 = vmatprep.mubr.f32.mxu0 %v3200_v58 }
 0x245   :  { %751 = vmatpush1.msra.mxu1 %v3201_v56  ;;  %784 = vmatprep.mubr.f32.mxu1 %v3200_v58  ;;  %v1621_v56 = vld [vmem:[%s3077_s0 + $0x10] sm:$0xff] }
 0x246   :  { %836 = vmatprep.subr.mxu0 %v3202_v6  ;;  %907 = vmatprep.subr.mxu1 %v3203_v1 }
 0x2e5   :  { %v528_v59 = vpop.f32.mrf.mxu0  ;;  %v599_v60 = vpop.f32.mrf.mxu1 }
 0x2e7   :  { %v530_v63 = vpop.f32.mrf.mxu0  ;;  %v601_v61 = vpop.f32.mrf.mxu1 }
 0x2e8   :  { %v608_v57 = vcombine.low %v528_v59, %v530_v63  ;;  %v609_v47 = vcombine.low %v599_v60, %v601_v61 }
 0x2ea   :  { %v616_v55 = vrot.slane %v608_v57, %v3184_v62  ;;  %v623_v53 = vrot.slane %v609_v47, %v3184_v62 }
 0x2ec   :  { %v624_v51 = vcombine.low %v616_v55, %v623_v53 }
 0x2ee   :  { %v626_v58 = vadd.f32 %v1621_v56, %v624_v51 }
 0x2f0   :  { %v1622_v52 = vmul.f32 -1.442695, %v626_v58  ;;  %v634_v50 = vrot.slane %v626_v58, 6 }
 0x2f2   :  { %1653 = vpow2.f32 %v1622_v52 }
 0x2ff   :  { %v1654_v6 = vpop.eup %1653 }
 0x300   :  { %v630_v1 = vadd.f32 1.0, %v1654_v6 }
 0x302   :  { %1655 = vrcp.f32 %v630_v1 }
 0x303   :  { %1657 = vtanh.f32 %v634_v50  ;;  %v3222_v50 = vld [vmem:[#allocation11_spill] sm:$0xff] }
 0x30f   :  { %v1656_v49 = vpop.eup %1655 }
 0x310   :  { %v638_v63 = vrot.slane %v1656_v49, 2  ;;  %v1658_v59 = vpop.eup %1657  ;;  %v644_v47 = vrot.slane %v1656_v49, 4 }
 0x311   :  { %v641_v60 = vmul.f32 %v1658_v59, %v1656_v49  ;;  %v3221_v49 = vld [vmem:[#allocation10_spill] sm:$0xff] }
 0x312   :  { %v640_v57 = vmul.f32 %v638_v63, %v2371_v54  ;;  %v3220_v54 = vld [vmem:[#allocation28_spill] sm:$0xff] }
 0x314   :  { %v2446_v61 = vadd.f32 %v641_v60, %v640_v57  ;;  %v1623_v60 = vld [vmem:[%s3077_s0 + $0x18] sm:$0xff] }
 0x316   :  { %1659 = vtanh.f32 %v2446_v61 }
 0x323   :  { %v1660_v55 = vpop.eup %1659 }
 0x324   :  { %v646_v51 = vmul.f32 %v1660_v55, %v644_v47 }
 0x326   :  { %714 = vmatmul.mubr.f32.vlgmr.msra.gmra.mxu0 %v646_v51  ;;  %785 = vmatmul.mubr.f32.vlgmr.msra.gmra.mxu1 %v646_v51 }
 0x327   :  { %837 = vmatpush1.msra.mxu0 %v1846_v2  ;;  %908 = vmatpush1.msra.mxu1 %v1853_v3  ;;  %v3204_v2 = vld [vmem:[#allocation13_spill] sm:$0xff]  ;;  %v3205_v3 = vld [vmem:[#allocation14_spill] sm:$0xff] }
 0x328   :  { %838 = vmatprep.subr.mxu0 %v1858_v4  ;;  %909 = vmatprep.subr.mxu1 %v1863_v5  ;;  %v3206_v4 = vld [vmem:[#allocation15_spill] sm:$0xff]  ;;  %v3207_v5 = vld [vmem:[#allocation16_spill] sm:$0xff] }
 0x329   :  { %839 = vmatpush1.msra.mxu0 %v1872_v7  ;;  %910 = vmatpush1.msra.mxu1 %v1877_v8  ;;  %v3208_v7 = vld [vmem:[#allocation17_spill] sm:$0xff]  ;;  %v3209_v8 = vld [vmem:[#allocation18_spill] sm:$0xff] }
 0x32a   :  { %840 = vmatprep.subr.mxu0 %v1882_v9  ;;  %911 = vmatprep.subr.mxu1 %v1889_v10  ;;  %v3210_v9 = vld [vmem:[#allocation19_spill] sm:$0xff]  ;;  %v3211_v10 = vld [vmem:[#allocation20_spill] sm:$0xff] }
 0x32b   :  { %841 = vmatpush1.msra.mxu0 %v1894_v11  ;;  %912 = vmatpush1.msra.mxu1 %v1899_v12  ;;  %v3212_v11 = vld [vmem:[#allocation21_spill] sm:$0xff]  ;;  %v3213_v12 = vld [vmem:[#allocation22_spill] sm:$0xff] }
 0x32c   :  { %842 = vmatprep.subr.mxu0 %v1906_v13  ;;  %913 = vmatprep.subr.mxu1 %v1911_v14  ;;  %v3214_v13 = vld [vmem:[#allocation23_spill] sm:$0xff]  ;;  %v3215_v14 = vld [vmem:[#allocation24_spill] sm:$0xff] }
 0x32d   :  { %843 = vmatpush1.msra.mxu0 %v1918_v15  ;;  %914 = vmatpush1.msra.mxu1 %v1923_v16  ;;  %v3216_v15 = vld [vmem:[#allocation25_spill] sm:$0xff]  ;;  %v3217_v16 = vld [vmem:[#allocation26_spill] sm:$0xff] }
 0x32e   :  { %844 = vmatprep.subr.mxu0 %v1930_v17  ;;  %915 = vmatprep.subr.mxu1 %v1935_v18  ;;  %v3218_v17 = vld [vmem:[#allocation27_spill] sm:$0xff]  ;;  %v3219_v18 = vmov 0.0  }
 0x32f   :  { %845 = vmatpush1.msra.mxu0 %v1942_v19  ;;  %916 = vmatpush1.msra.mxu1 %v1947_v20 }
 0x330   :  { %846 = vmatprep.subr.mxu0 %v1954_v21  ;;  %917 = vmatprep.subr.mxu1 %v1959_v22 }
 0x331   :  { %847 = vmatpush1.msra.mxu0 %v1966_v23  ;;  %918 = vmatpush1.msra.mxu1 %v1971_v24 }
 0x332   :  { %848 = vmatprep.subr.mxu0 %v1978_v25  ;;  %919 = vmatprep.subr.mxu1 %v1983_v26 }
 0x333   :  { %849 = vmatpush1.msra.mxu0 %v1990_v27  ;;  %920 = vmatpush1.msra.mxu1 %v1995_v28 }
 0x334   :  { %850 = vmatprep.subr.mxu0 %v2002_v29  ;;  %921 = vmatprep.subr.mxu1 %v2007_v30 }
 0x335   :  { %851 = vmatpush1.msra.mxu0 %v2014_v31  ;;  %922 = vmatpush1.msra.mxu1 %v2019_v32 }
 0x336   :  { %852 = vmatprep.subr.mxu0 %v2026_v33  ;;  %923 = vmatprep.subr.mxu1 %v2031_v34 }
 0x337   :  { %853 = vmatpush1.msra.mxu0 %v2038_v35  ;;  %924 = vmatpush1.msra.mxu1 %v2043_v36 }
 0x338   :  { %854 = vmatprep.subr.mxu0 %v2050_v37  ;;  %925 = vmatprep.subr.mxu1 %v2055_v38 }
 0x339   :  { %855 = vmatpush1.msra.mxu0 %v2062_v39  ;;  %926 = vmatpush1.msra.mxu1 %v2067_v40 }
 0x33a   :  { %856 = vmatprep.subr.mxu0 %v2074_v41  ;;  %927 = vmatprep.subr.mxu1 %v2079_v42 }
 0x33b   :  { %857 = vmatpush1.msra.mxu0 %v2086_v43  ;;  %928 = vmatpush1.msra.mxu1 %v2091_v44 }
 0x33c   :  { %858 = vmatprep.subr.mxu0 %v2098_v45  ;;  %929 = vmatprep.subr.mxu1 %v2103_v46 }
 0x33d   :  { %859 = vmatpush1.msra.mxu0 %v3166_v0  ;;  %930 = vmatpush1.msra.mxu1 %v2115_v48 }
 0x33e   :  { %860 = vmatprep.subr.mxu0 %v3204_v2  ;;  %931 = vmatprep.subr.mxu1 %v3205_v3 }
 0x33f   :  { %861 = vmatpush1.msra.mxu0 %v3206_v4  ;;  %932 = vmatpush1.msra.mxu1 %v3207_v5 }
 0x340   :  { %862 = vmatprep.subr.mxu0 %v3208_v7  ;;  %933 = vmatprep.subr.mxu1 %v3209_v8 }
 0x341   :  { %863 = vmatpush1.msra.mxu0 %v3210_v9  ;;  %934 = vmatpush1.msra.mxu1 %v3211_v10 }
 0x342   :  { %864 = vmatprep.subr.mxu0 %v3212_v11  ;;  %935 = vmatprep.subr.mxu1 %v3213_v12 }
 0x343   :  { %865 = vmatpush1.msra.mxu0 %v3214_v13  ;;  %936 = vmatpush1.msra.mxu1 %v3215_v14 }
 0x344   :  { %866 = vmatprep.subr.mxu0 %v3216_v15  ;;  %937 = vmatprep.subr.mxu1 %v3217_v16 }
 0x345   :  { %867 = vmatpush1.msra.mxu0 %v3218_v17  ;;  %900 = vmatprep.mubr.f32.mxu0 %v3219_v18 }
 0x346   :  { %938 = vmatpush1.msra.mxu1 %v3220_v54  ;;  %971 = vmatprep.mubr.f32.mxu1 %v3219_v18 }
 0x347   :  { %1023 = vmatprep.subr.mxu0 %v3221_v49  ;;  %1094 = vmatprep.subr.mxu1 %v3222_v50 }
 0x3e6   :  { %v715_v52 = vpop.f32.mrf.mxu0  ;;  %v786_v56 = vpop.f32.mrf.mxu1 }
 0x3e8   :  { %v717_v6 = vpop.f32.mrf.mxu0  ;;  %v788_v1 = vpop.f32.mrf.mxu1 }
 0x3e9   :  { %v795_v53 = vcombine.low %v715_v52, %v717_v6  ;;  %v796_v58 = vcombine.low %v786_v56, %v788_v1 }
 0x3eb   :  { %v803_v63 = vrot.slane %v795_v53, %v3184_v62  ;;  %v810_v59 = vrot.slane %v796_v58, %v3184_v62 }
 0x3ed   :  { %v811_v57 = vcombine.low %v803_v63, %v810_v59 }
 0x3ef   :  { %v813_v47 = vadd.f32 %v1623_v60, %v811_v57  ;;  %v2527_v60 = vld [vmem:[%s3078_s1 + $0x1e0] sm:$0xff]  ;;  %v2545_v57 = vld [vmem:[%s3078_s1 + $0x1d8] sm:$0xff] }
 0x3f1   :  { %v1624_v55 = vmul.f32 -1.442695, %v813_v47  ;;  %v821_v50 = vrot.slane %v813_v47, 6  ;;  %v2551_v47 = vld [vmem:[%s3078_s1 + $0x1c0] sm:$0xff] }
 0x3f3   :  { %1661 = vpow2.f32 %v1624_v55  ;;  %v2557_v55 = vld [vmem:[%s3078_s1 + $0x1d0] sm:$0xff] }
 0x400   :  { %v1662_v51 = vpop.eup %1661 }
 0x401   :  { %v817_v49 = vadd.f32 1.0, %v1662_v51  ;;  %v2563_v51 = vld [vmem:[%s3078_s1 + $0x1a8] sm:$0xff] }
 0x403   :  { %1663 = vrcp.f32 %v817_v49  ;;  %v2569_v49 = vld [vmem:[%s3078_s1 + $0x1b8] sm:$0xff] }
 0x404   :  { %1665 = vtanh.f32 %v821_v50  ;;  %v2575_v50 = vld [vmem:[%s3078_s1 + $0x1a0] sm:$0xff] }
 0x410   :  { %v1664_v54 = vpop.eup %1663 }
 0x411   :  { %v825_v52 = vrot.slane %v1664_v54, 2  ;;  %v1666_v56 = vpop.eup %1665  ;;  %v831_v58 = vrot.slane %v1664_v54, 4 }
 0x412   :  { %v828_v6 = vmul.f32 %v1666_v56, %v1664_v54  ;;  %v2539_v54 = vld [vmem:[%s3078_s1 + $0x1c8] sm:$0xff] }
 0x413   :  { %v827_v1 = vmul.f32 %v825_v52, %v2446_v61  ;;  %v2533_v61 = vld [vmem:[%s3078_s1 + $0x1f0] sm:$0xff]  ;;  %v2587_v56 = vld [vmem:[%s3078_s1 + $0x188] sm:$0xff] }
 0x414   :  { %v2581_v52 = vld [vmem:[%s3078_s1 + $0x1b0] sm:$0xff] }
 0x415   :  { %v2521_v53 = vadd.f32 %v828_v6, %v827_v1  ;;  %v2593_v6 = vld [vmem:[%s3078_s1 + $0x198] sm:$0xff]  ;;  %v2599_v1 = vld [vmem:[%s3078_s1 + $0x180] sm:$0xff] }
 0x417   :  { %1667 = vtanh.f32 %v2521_v53 }
 0x424   :  { %v1668_v63 = vpop.eup %1667 }
 0x425   :  { %v833_v59 = vmul.f32 %v1668_v63, %v831_v58  ;;  %v2605_v58 = vld [vmem:[%s3078_s1 + $0x190] sm:$0xff]  ;;  %v2611_v63 = vld [vmem:[%s3078_s1 + $0x168] sm:$0xff] }
 0x427   :  { %901 = vmatmul.mubr.f32.vlgmr.msra.gmra.mxu0 %v833_v59  ;;  %972 = vmatmul.mubr.f32.vlgmr.msra.gmra.mxu1 %v833_v59  ;;  %v2617_v59 = vld [vmem:[%s3078_s1 + $0x178] sm:$0xff] }
 0x428   :  { %1024 = vmatpush1.msra.mxu0 %v2527_v60  ;;  %1095 = vmatpush1.msra.mxu1 %v2533_v61 }
 0x429   :  { %1025 = vmatprep.subr.mxu0 %v2539_v54  ;;  %1096 = vmatprep.subr.mxu1 %v2545_v57 }
 0x42a   :  { %1026 = vmatpush1.msra.mxu0 %v2551_v47  ;;  %1097 = vmatpush1.msra.mxu1 %v2557_v55 }
 0x42b   :  { %1027 = vmatprep.subr.mxu0 %v2563_v51  ;;  %1098 = vmatprep.subr.mxu1 %v2569_v49 }
 0x42c   :  { %1028 = vmatpush1.msra.mxu0 %v2575_v50  ;;  %1099 = vmatpush1.msra.mxu1 %v2581_v52 }
 0x42d   :  { %1029 = vmatprep.subr.mxu0 %v2587_v56  ;;  %1100 = vmatprep.subr.mxu1 %v2593_v6 }
 0x42e   :  { %1030 = vmatpush1.msra.mxu0 %v2599_v1  ;;  %1101 = vmatpush1.msra.mxu1 %v2605_v58 }
 0x42f   :  { %1031 = vmatprep.subr.mxu0 %v2611_v63  ;;  %1102 = vmatprep.subr.mxu1 %v2617_v59 }
 0x430   :  { %1032 = vmatpush1.msra.mxu0 %v1942_v19  ;;  %1103 = vmatpush1.msra.mxu1 %v1947_v20  ;;  %v3223_v19 = vld [vmem:[#allocation28_spill] sm:$0xff]  ;;  %v2671_v20 = vld [vmem:[%s3078_s1 + $0x1e8] sm:$0xff] }
 0x431   :  { %1033 = vmatprep.subr.mxu0 %v1954_v21  ;;  %1104 = vmatprep.subr.mxu1 %v1959_v22  ;;  %v2677_v21 = vld [vmem:[%s3078_s1 + $0x1f8] sm:$0xff] }
 0x432   :  { %1034 = vmatpush1.msra.mxu0 %v1966_v23  ;;  %1105 = vmatpush1.msra.mxu1 %v1971_v24 }
 0x433   :  { %1035 = vmatprep.subr.mxu0 %v1978_v25  ;;  %1106 = vmatprep.subr.mxu1 %v1983_v26 }
 0x434   :  { %1036 = vmatpush1.msra.mxu0 %v1990_v27  ;;  %1107 = vmatpush1.msra.mxu1 %v1995_v28 }
 0x435   :  { %1037 = vmatprep.subr.mxu0 %v2002_v29  ;;  %1108 = vmatprep.subr.mxu1 %v2007_v30  ;;  %v1625_v30 = vld [vmem:[%s3077_s0 + $0x20] sm:$0xff] }
 0x436   :  { %1038 = vmatpush1.msra.mxu0 %v2014_v31  ;;  %1109 = vmatpush1.msra.mxu1 %v2019_v32 }
 0x437   :  { %1039 = vmatprep.subr.mxu0 %v2026_v33  ;;  %1110 = vmatprep.subr.mxu1 %v2031_v34 }
 0x438   :  { %1040 = vmatpush1.msra.mxu0 %v2038_v35  ;;  %1111 = vmatpush1.msra.mxu1 %v2043_v36 }
 0x439   :  { %1041 = vmatprep.subr.mxu0 %v2050_v37  ;;  %1112 = vmatprep.subr.mxu1 %v2055_v38 }
 0x43a   :  { %1042 = vmatpush1.msra.mxu0 %v2062_v39  ;;  %1113 = vmatpush1.msra.mxu1 %v2067_v40 }
 0x43b   :  { %1043 = vmatprep.subr.mxu0 %v2074_v41  ;;  %1114 = vmatprep.subr.mxu1 %v2079_v42 }
 0x43c   :  { %1044 = vmatpush1.msra.mxu0 %v2086_v43  ;;  %1115 = vmatpush1.msra.mxu1 %v2091_v44 }
 0x43d   :  { %1045 = vmatprep.subr.mxu0 %v2098_v45  ;;  %1116 = vmatprep.subr.mxu1 %v2103_v46  ;;  %v2708_v46 = vld [vmem:[%s3078_s1 + $0x160] sm:$0xff] }
 0x43e   :  { %1046 = vmatpush1.msra.mxu0 %v3166_v0  ;;  %1117 = vmatpush1.msra.mxu1 %v2115_v48  ;;  %v2714_v48 = vld [vmem:[%s3078_s1 + $0x170] sm:$0xff]  ;;  %v2720_v0 = vld [vmem:[%s3078_s1 + $0x148] sm:$0xff] }
 0x43f   :  { %1047 = vmatprep.subr.mxu0 %v3204_v2  ;;  %1118 = vmatprep.subr.mxu1 %v3205_v3  ;;  %v2726_v2 = vld [vmem:[%s3078_s1 + $0x158] sm:$0xff]  ;;  %v2732_v3 = vld [vmem:[%s3078_s1 + $0x140] sm:$0xff] }
 0x440   :  { %1048 = vmatpush1.msra.mxu0 %v3206_v4  ;;  %1119 = vmatpush1.msra.mxu1 %v3207_v5  ;;  %v2738_v4 = vld [vmem:[%s3078_s1 + $0x150] sm:$0xff]  ;;  %v2744_v5 = vld [vmem:[%s3078_s1 + $0x128] sm:$0xff] }
 0x441   :  { %1049 = vmatprep.subr.mxu0 %v3208_v7  ;;  %1120 = vmatprep.subr.mxu1 %v3209_v8  ;;  %v2750_v7 = vld [vmem:[%s3078_s1 + $0x138] sm:$0xff]  ;;  %v2756_v8 = vld [vmem:[%s3078_s1 + $0x120] sm:$0xff] }
 0x442   :  { %1050 = vmatpush1.msra.mxu0 %v3210_v9  ;;  %1121 = vmatpush1.msra.mxu1 %v3211_v10  ;;  %v2762_v9 = vld [vmem:[%s3078_s1 + $0x130] sm:$0xff]  ;;  %v2768_v10 = vld [vmem:[%s3078_s1 + $0x108] sm:$0xff] }
 0x443   :  { %1051 = vmatprep.subr.mxu0 %v3212_v11  ;;  %1122 = vmatprep.subr.mxu1 %v3213_v12  ;;  %v2774_v11 = vld [vmem:[%s3078_s1 + $0x118] sm:$0xff]  ;;  %v2780_v12 = vld [vmem:[%s3078_s1 + $0x100] sm:$0xff] }
 0x444   :  { %1052 = vmatpush1.msra.mxu0 %v3214_v13  ;;  %1123 = vmatpush1.msra.mxu1 %v3215_v14  ;;  %v2786_v13 = vld [vmem:[%s3078_s1 + $0x110] sm:$0xff]  ;;  %v2792_v14 = vld [vmem:[%s3078_s1 + $0xe8] sm:$0xff] }
 0x445   :  { %1053 = vmatprep.subr.mxu0 %v3216_v15  ;;  %1124 = vmatprep.subr.mxu1 %v3217_v16  ;;  %v2798_v15 = vld [vmem:[%s3078_s1 + $0xf8] sm:$0xff]  ;;  %v2804_v16 = vld [vmem:[%s3078_s1 + $0xe0] sm:$0xff] }
 0x446   :  { %1054 = vmatpush1.msra.mxu0 %v3218_v17  ;;  %1087 = vmatprep.mubr.f32.mxu0 %v3219_v18  ;;  %v2810_v17 = vld [vmem:[%s3078_s1 + $0xf0] sm:$0xff] }
 0x447   :  { %1125 = vmatpush1.msra.mxu1 %v3223_v19  ;;  %1158 = vmatprep.mubr.f32.mxu1 %v3219_v18  ;;  %v2822_v19 = vld [vmem:[%s3078_s1 + $0xd8] sm:$0xff] }
 0x448   :  { %1210 = vmatprep.subr.mxu0 %v2671_v20  ;;  %1281 = vmatprep.subr.mxu1 %v2677_v21 }
 0x4e7   :  { %v902_v22 = vpop.f32.mrf.mxu0  ;;  %v973_v23 = vpop.f32.mrf.mxu1 }
 0x4e9   :  { %v904_v24 = vpop.f32.mrf.mxu0  ;;  %v975_v25 = vpop.f32.mrf.mxu1 }
 0x4ea   :  { %v982_v26 = vcombine.low %v902_v22, %v904_v24  ;;  %v983_v27 = vcombine.low %v973_v23, %v975_v25  ;;  %v2828_v22 = vld [vmem:[%s3078_s1 + $0xc0] sm:$0xff]  ;;  %v2834_v23 = vld [vmem:[%s3078_s1 + $0xd0] sm:$0xff]  ;;  %v2840_v24 = vld [vmem:[%s3078_s1 + $0xa8] sm:$0xff] }
 0x4eb   :  { %v2846_v25 = vld [vmem:[%s3078_s1 + $0xb8] sm:$0xff] }
 0x4ec   :  { %v990_v28 = vrot.slane %v982_v26, %v3184_v62  ;;  %v997_v29 = vrot.slane %v983_v27, %v3184_v62  ;;  %v2852_v26 = vld [vmem:[%s3078_s1 + $0xa0] sm:$0xff]  ;;  %v2858_v27 = vld [vmem:[%s3078_s1 + $0xb0] sm:$0xff] }
 0x4ee   :  { %v998_v31 = vcombine.low %v990_v28, %v997_v29  ;;  %v2864_v28 = vld [vmem:[%s3078_s1 + $0x88] sm:$0xff]  ;;  %v2870_v29 = vld [vmem:[%s3078_s1 + $0x98] sm:$0xff] }
 0x4f0   :  { %v1000_v32 = vadd.f32 %v1625_v30, %v998_v31  ;;  %v2876_v30 = vld [vmem:[%s3078_s1 + $0x80] sm:$0xff]  ;;  %v2882_v31 = vld [vmem:[%s3078_s1 + $0x90] sm:$0xff] }
 0x4f2   :  { %v1626_v33 = vmul.f32 -1.442695, %v1000_v32  ;;  %v1008_v36 = vrot.slane %v1000_v32, 6  ;;  %v2888_v32 = vld [vmem:[%s3078_s1 + $0x68] sm:$0xff] }
 0x4f3   :  { %3224 = vst [vmem:[#allocation12_spill] sm:$0xff] %v2888_v32 }
 0x4f4   :  { %1669 = vpow2.f32 %v1626_v33  ;;  %v2894_v33 = vld [vmem:[%s3078_s1 + $0x78] sm:$0xff] }
 0x4f5   :  { %3225 = vst [vmem:[#allocation29_spill] sm:$0xff] %v2894_v33 }
 0x501   :  { %v1670_v34 = vpop.eup %1669 }
 0x502   :  { %v1004_v35 = vadd.f32 1.0, %v1670_v34  ;;  %v2900_v34 = vld [vmem:[%s3078_s1 + $0x60] sm:$0xff] }
 0x503   :  { %3226 = vst [vmem:[#allocation13_spill] sm:$0xff] %v2900_v34 }
 0x504   :  { %1671 = vrcp.f32 %v1004_v35  ;;  %v2906_v35 = vld [vmem:[%s3078_s1 + $0x70] sm:$0xff] }
 0x505   :  { %1673 = vtanh.f32 %v1008_v36  ;;  %3227 = vst [vmem:[#allocation14_spill] sm:$0xff] %v2906_v35  ;;  %v2912_v36 = vld [vmem:[%s3078_s1 + $0x48] sm:$0xff] }
 0x506   :  { %3228 = vst [vmem:[#allocation15_spill] sm:$0xff] %v2912_v36 }
 0x511   :  { %v1672_v37 = vpop.eup %1671 }
 0x512   :  { %v1012_v38 = vrot.slane %v1672_v37, 2  ;;  %v1674_v39 = vpop.eup %1673  ;;  %v1018_v43 = vrot.slane %v1672_v37, 4 }
 0x513   :  { %v1015_v40 = vmul.f32 %v1674_v39, %v1672_v37  ;;  %v2918_v37 = vld [vmem:[%s3078_s1 + $0x58] sm:$0xff]  ;;  %v2930_v39 = vld [vmem:[%s3078_s1 + $0x50] sm:$0xff] }
 0x514   :  { %v1014_v41 = vmul.f32 %v1012_v38, %v2521_v53  ;;  %v2816_v53 = vld [vmem:[%s3078_s1 + $0xc8] sm:$0xff]  ;;  %3229 = vst [vmem:[#allocation16_spill] sm:$0xff] %v2918_v37  ;;  %v2924_v38 = vld [vmem:[%s3078_s1 + $0x40] sm:$0xff]  ;;  %3231 = vst [vmem:[#allocation18_spill] sm:$0xff] %v2930_v39 }
 0x515   :  { %3230 = vst [vmem:[#allocation17_spill] sm:$0xff] %v2924_v38 }
 0x516   :  { %v2686_v42 = vadd.f32 %v1015_v40, %v1014_v41  ;;  %v2936_v40 = vld [vmem:[%s3078_s1 + $0x28] sm:$0xff]  ;;  %v2942_v41 = vld [vmem:[%s3078_s1 + $0x38] sm:$0xff] }
 0x517   :  { %3232 = vst [vmem:[#allocation19_spill] sm:$0xff] %v2936_v40  ;;  %3233 = vst [vmem:[#allocation20_spill] sm:$0xff] %v2942_v41 }
 0x518   :  { %1675 = vtanh.f32 %v2686_v42 }
 0x525   :  { %v1676_v44 = vpop.eup %1675 }
 0x526   :  { %v1020_v45 = vmul.f32 %v1676_v44, %v1018_v43  ;;  %v2948_v43 = vld [vmem:[%s3078_s1 + $0x20] sm:$0xff]  ;;  %v2954_v44 = vld [vmem:[%s3078_s1 + $0x30] sm:$0xff] }
 0x527   :  { %3234 = vst [vmem:[#allocation21_spill] sm:$0xff] %v2948_v43  ;;  %3235 = vst [vmem:[#allocation22_spill] sm:$0xff] %v2954_v44 }
 0x528   :  { %1088 = vmatmul.mubr.f32.vlgmr.msra.gmra.mxu0 %v1020_v45  ;;  %1159 = vmatmul.mubr.f32.vlgmr.msra.gmra.mxu1 %v1020_v45  ;;  %v2960_v45 = vld [vmem:[%s3078_s1 + $0x8] sm:$0xff] }
 0x529   :  { %1211 = vmatpush1.msra.mxu0 %v2527_v60  ;;  %1282 = vmatpush1.msra.mxu1 %v2533_v61  ;;  %3236 = vst [vmem:[#allocation23_spill] sm:$0xff] %v2960_v45 }
 0x52a   :  { %1212 = vmatprep.subr.mxu0 %v2539_v54  ;;  %1283 = vmatprep.subr.mxu1 %v2545_v57 }
 0x52b   :  { %1213 = vmatpush1.msra.mxu0 %v2551_v47  ;;  %1284 = vmatpush1.msra.mxu1 %v2557_v55 }
 0x52c   :  { %1214 = vmatprep.subr.mxu0 %v2563_v51  ;;  %1285 = vmatprep.subr.mxu1 %v2569_v49 }
 0x52d   :  { %1215 = vmatpush1.msra.mxu0 %v2575_v50  ;;  %1286 = vmatpush1.msra.mxu1 %v2581_v52 }
 0x52e   :  { %1216 = vmatprep.subr.mxu0 %v2587_v56  ;;  %1287 = vmatprep.subr.mxu1 %v2593_v6 }
 0x52f   :  { %1217 = vmatpush1.msra.mxu0 %v2599_v1  ;;  %1288 = vmatpush1.msra.mxu1 %v2605_v58 }
 0x530   :  { %1218 = vmatprep.subr.mxu0 %v2611_v63  ;;  %1289 = vmatprep.subr.mxu1 %v2617_v59 }
 0x531   :  { %1219 = vmatpush1.msra.mxu0 %v2708_v46  ;;  %1290 = vmatpush1.msra.mxu1 %v2714_v48 }
 0x532   :  { %1220 = vmatprep.subr.mxu0 %v2720_v0  ;;  %1291 = vmatprep.subr.mxu1 %v2726_v2 }
 0x533   :  { %1221 = vmatpush1.msra.mxu0 %v2732_v3  ;;  %1292 = vmatpush1.msra.mxu1 %v2738_v4 }
 0x534   :  { %1222 = vmatprep.subr.mxu0 %v2744_v5  ;;  %1293 = vmatprep.subr.mxu1 %v2750_v7 }
 0x535   :  { %1223 = vmatpush1.msra.mxu0 %v2756_v8  ;;  %1294 = vmatpush1.msra.mxu1 %v2762_v9 }
 0x536   :  { %1224 = vmatprep.subr.mxu0 %v2768_v10  ;;  %1295 = vmatprep.subr.mxu1 %v2774_v11 }
 0x537   :  { %1225 = vmatpush1.msra.mxu0 %v2780_v12  ;;  %1296 = vmatpush1.msra.mxu1 %v2786_v13 }
 0x538   :  { %1226 = vmatprep.subr.mxu0 %v2792_v14  ;;  %1297 = vmatprep.subr.mxu1 %v2798_v15 }
 0x539   :  { %1227 = vmatpush1.msra.mxu0 %v2804_v16  ;;  %1298 = vmatpush1.msra.mxu1 %v2810_v17 }
 0x53a   :  { %1228 = vmatprep.subr.mxu0 %v2816_v53  ;;  %1299 = vmatprep.subr.mxu1 %v2822_v19 }
 0x53b   :  { %1229 = vmatpush1.msra.mxu0 %v2828_v22  ;;  %1300 = vmatpush1.msra.mxu1 %v2834_v23 }
 0x53c   :  { %1230 = vmatprep.subr.mxu0 %v2840_v24  ;;  %1301 = vmatprep.subr.mxu1 %v2846_v25 }
 0x53d   :  { %1231 = vmatpush1.msra.mxu0 %v2852_v26  ;;  %1302 = vmatpush1.msra.mxu1 %v2858_v27 }
 0x53e   :  { %1232 = vmatprep.subr.mxu0 %v2864_v28  ;;  %1303 = vmatprep.subr.mxu1 %v2870_v29 }
 0x53f   :  { %1233 = vmatpush1.msra.mxu0 %v2876_v30  ;;  %1304 = vmatpush1.msra.mxu1 %v2882_v31 }
 0x540   :  { %1234 = vmatprep.subr.mxu0 %v2888_v32  ;;  %1305 = vmatprep.subr.mxu1 %v2894_v33 }
 0x541   :  { %1235 = vmatpush1.msra.mxu0 %v2900_v34  ;;  %1306 = vmatpush1.msra.mxu1 %v2906_v35 }
 0x542   :  { %1236 = vmatprep.subr.mxu0 %v2912_v36  ;;  %1307 = vmatprep.subr.mxu1 %v2918_v37 }
 0x543   :  { %1237 = vmatpush1.msra.mxu0 %v2924_v38  ;;  %1308 = vmatpush1.msra.mxu1 %v2930_v39 }
 0x544   :  { %1238 = vmatprep.subr.mxu0 %v2936_v40  ;;  %1309 = vmatprep.subr.mxu1 %v2942_v41  ;;  %v2966_v41 = vld [vmem:[%s3078_s1 + $0x18] sm:$0xff] }
 0x545   :  { %1239 = vmatpush1.msra.mxu0 %v2948_v43  ;;  %1310 = vmatpush1.msra.mxu1 %v2954_v44  ;;  %3237 = vst [vmem:[#allocation24_spill] sm:$0xff] %v2966_v41  ;;  %v2972_v43 = vld [vmem:[%s3078_s1] sm:$0xff] }
 0x546   :  { %1240 = vmatprep.subr.mxu0 %v2960_v45  ;;  %1311 = vmatprep.subr.mxu1 %v2966_v41  ;;  %3238 = vst [vmem:[#allocation25_spill] sm:$0xff] %v2972_v43  ;;  %v2979_v45 = vld [vmem:[%s3078_s1 + $0x10] sm:$0xff] }
 0x547   :  { %1241 = vmatpush1.msra.mxu0 %v2972_v43  ;;  %1274 = vmatprep.mubr.f32.mxu0 %v3219_v18  ;;  %3239 = vst [vmem:[#allocation26_spill] sm:$0xff] %v2979_v45 }
 0x548   :  { %1312 = vmatpush1.msra.mxu1 %v2979_v45  ;;  %1345 = vmatprep.mubr.f32.mxu1 %v3219_v18  ;;  %v1627_v45 = vld [vmem:[%s3077_s0 + $0x28] sm:$0xff] }
 0x549   :  { %1397 = vmatprep.subr.mxu0 %v2671_v20  ;;  %1468 = vmatprep.subr.mxu1 %v2677_v21 }
 0x5e8   :  { %v1089_v41 = vpop.f32.mrf.mxu0  ;;  %v1160_v44 = vpop.f32.mrf.mxu1 }
 0x5ea   :  { %v1091_v40 = vpop.f32.mrf.mxu0  ;;  %v1162_v39 = vpop.f32.mrf.mxu1 }
 0x5eb   :  { %v1169_v43 = vcombine.low %v1089_v41, %v1091_v40  ;;  %v1170_v38 = vcombine.low %v1160_v44, %v1162_v39 }
 0x5ed   :  { %v1177_v37 = vrot.slane %v1169_v43, %v3184_v62  ;;  %v1184_v36 = vrot.slane %v1170_v38, %v3184_v62 }
 0x5ef   :  { %v1185_v35 = vcombine.low %v1177_v37, %v1184_v36 }
 0x5f1   :  { %v1187_v18 = vadd.f32 %v1627_v45, %v1185_v35 }
 0x5f3   :  { %v1628_v34 = vmul.f32 -1.442695, %v1187_v18  ;;  %v1195_v33 = vrot.slane %v1187_v18, 6  ;;  %v3240_v18 = vld [vmem:[#allocation12_spill] sm:$0xff] }
 0x5f5   :  { %1677 = vpow2.f32 %v1628_v34 }
 0x602   :  { %v1678_v20 = vpop.eup %1677 }
 0x603   :  { %v1191_v21 = vadd.f32 1.0, %v1678_v20 }
 0x605   :  { %1679 = vrcp.f32 %v1191_v21 }
 0x606   :  { %1681 = vtanh.f32 %v1195_v33  ;;  %v1631_v33 = vld [vmem:[%s3077_s0 + $0x38] sm:$0xff] }
 0x612   :  { %v1680_v32 = vpop.eup %1679 }
 0x613   :  { %v1199_v40 = vrot.slane %v1680_v32, 2  ;;  %v1682_v39 = vpop.eup %1681  ;;  %v1205_v44 = vrot.slane %v1680_v32, 4 }
 0x614   :  { %v1202_v41 = vmul.f32 %v1682_v39, %v1680_v32 }
 0x615   :  { %v1201_v43 = vmul.f32 %v1199_v40, %v2686_v42 }
 0x617   :  { %v2991_v38 = vadd.f32 %v1202_v41, %v1201_v43 }
 0x619   :  { %1683 = vtanh.f32 %v2991_v38 }
 0x626   :  { %v1684_v36 = vpop.eup %1683 }
 0x627   :  { %v1207_v35 = vmul.f32 %v1684_v36, %v1205_v44 }
 0x629   :  { %1275 = vmatmul.mubr.f32.vlgmr.msra.gmra.mxu0 %v1207_v35  ;;  %1346 = vmatmul.mubr.f32.vlgmr.msra.gmra.mxu1 %v1207_v35 }
 0x62a   :  { %1398 = vmatpush1.msra.mxu0 %v2527_v60  ;;  %1469 = vmatpush1.msra.mxu1 %v2533_v61  ;;  %v3241_v60 = vld [vmem:[#allocation29_spill] sm:$0xff] }
 0x62b   :  { %1399 = vmatprep.subr.mxu0 %v2539_v54  ;;  %1470 = vmatprep.subr.mxu1 %v2545_v57  ;;  %v3242_v61 = vld [vmem:[#allocation13_spill] sm:$0xff]  ;;  %v3243_v54 = vld [vmem:[#allocation14_spill] sm:$0xff]  ;;  %v3244_v57 = vld [vmem:[#allocation15_spill] sm:$0xff] }
 0x62c   :  { %1400 = vmatpush1.msra.mxu0 %v2551_v47  ;;  %1471 = vmatpush1.msra.mxu1 %v2557_v55  ;;  %v3245_v47 = vld [vmem:[#allocation16_spill] sm:$0xff]  ;;  %v3246_v55 = vld [vmem:[#allocation17_spill] sm:$0xff] }
 0x62d   :  { %1401 = vmatprep.subr.mxu0 %v2563_v51  ;;  %1472 = vmatprep.subr.mxu1 %v2569_v49  ;;  %v3247_v51 = vld [vmem:[#allocation18_spill] sm:$0xff]  ;;  %v3248_v49 = vld [vmem:[#allocation19_spill] sm:$0xff] }
 0x62e   :  { %1402 = vmatpush1.msra.mxu0 %v2575_v50  ;;  %1473 = vmatpush1.msra.mxu1 %v2581_v52  ;;  %v3249_v50 = vld [vmem:[#allocation20_spill] sm:$0xff]  ;;  %v3250_v52 = vld [vmem:[#allocation21_spill] sm:$0xff] }
 0x62f   :  { %1403 = vmatprep.subr.mxu0 %v2587_v56  ;;  %1474 = vmatprep.subr.mxu1 %v2593_v6  ;;  %v3251_v56 = vld [vmem:[#allocation22_spill] sm:$0xff]  ;;  %v3252_v6 = vld [vmem:[#allocation23_spill] sm:$0xff] }
 0x630   :  { %1404 = vmatpush1.msra.mxu0 %v2599_v1  ;;  %1475 = vmatpush1.msra.mxu1 %v2605_v58  ;;  %v3253_v1 = vld [vmem:[#allocation24_spill] sm:$0xff]  ;;  %v3254_v58 = vld [vmem:[#allocation25_spill] sm:$0xff] }
 0x631   :  { %1405 = vmatprep.subr.mxu0 %v2611_v63  ;;  %1476 = vmatprep.subr.mxu1 %v2617_v59  ;;  %v3255_v63 = vmov 0.0   ;;  %v3256_v59 = vld [vmem:[#allocation26_spill] sm:$0xff] }
 0x632   :  { %1406 = vmatpush1.msra.mxu0 %v2708_v46  ;;  %1477 = vmatpush1.msra.mxu1 %v2714_v48 }
 0x633   :  { %1407 = vmatprep.subr.mxu0 %v2720_v0  ;;  %1478 = vmatprep.subr.mxu1 %v2726_v2 }
 0x634   :  { %1408 = vmatpush1.msra.mxu0 %v2732_v3  ;;  %1479 = vmatpush1.msra.mxu1 %v2738_v4 }
 0x635   :  { %1409 = vmatprep.subr.mxu0 %v2744_v5  ;;  %1480 = vmatprep.subr.mxu1 %v2750_v7  ;;  %v1629_v7 = vld [vmem:[%s3077_s0 + $0x30] sm:$0xff]  ;;  %s1765_s0 = scalar_lea.vmem %s1607_s14, 32 }
 0x636   :  { %1410 = vmatpush1.msra.mxu0 %v2756_v8  ;;  %1481 = vmatpush1.msra.mxu1 %v2762_v9  ;;  %p1766_p0 = scmp.ne.s32.totalorder %s1607_s14, %s1765_s0  ;;  %p1771_p2 = scmp.lt.s32.totalorder %s1765_s0, %s1765_s0 }
 0x637   :  { %1411 = vmatprep.subr.mxu0 %v2768_v10  ;;  %1482 = vmatprep.subr.mxu1 %v2774_v11 }
 0x638   :  { %1412 = vmatpush1.msra.mxu0 %v2780_v12  ;;  %1483 = vmatpush1.msra.mxu1 %v2786_v13  ;;  %p1772_p3 = por %p1771_p2, %p1770_p1 }
 0x639   :  { %1413 = vmatprep.subr.mxu0 %v2792_v14  ;;  %1484 = vmatprep.subr.mxu1 %v2798_v15 }
 0x63a   :  { %1414 = vmatpush1.msra.mxu0 %v2804_v16  ;;  %1485 = vmatpush1.msra.mxu1 %v2810_v17  ;;  %p1773_p4 = pnand %p1772_p3, %p1766_p0 }
 0x63b   :  { %1415 = vmatprep.subr.mxu0 %v2816_v53  ;;  %1486 = vmatprep.subr.mxu1 %v2822_v19 }
 0x63c   :  { %1416 = vmatpush1.msra.mxu0 %v2828_v22  ;;  %1487 = vmatpush1.msra.mxu1 %v2834_v23 }
 0x63d   :  { %1417 = vmatprep.subr.mxu0 %v2840_v24  ;;  %1488 = vmatprep.subr.mxu1 %v2846_v25 }
 0x63e   :  { %1418 = vmatpush1.msra.mxu0 %v2852_v26  ;;  %1489 = vmatpush1.msra.mxu1 %v2858_v27 }
 0x63f   :  { %1419 = vmatprep.subr.mxu0 %v2864_v28  ;;  %1490 = vmatprep.subr.mxu1 %v2870_v29 }
 0x640   :  { %1420 = vmatpush1.msra.mxu0 %v2876_v30  ;;  %1491 = vmatpush1.msra.mxu1 %v2882_v31 }
 0x641   :  { %1421 = vmatprep.subr.mxu0 %v3240_v18  ;;  %1492 = vmatprep.subr.mxu1 %v3241_v60 }
 0x642   :  { %1422 = vmatpush1.msra.mxu0 %v3242_v61  ;;  %1493 = vmatpush1.msra.mxu1 %v3243_v54 }
 0x643   :  { %1423 = vmatprep.subr.mxu0 %v3244_v57  ;;  %1494 = vmatprep.subr.mxu1 %v3245_v47 }
 0x644   :  { %1424 = vmatpush1.msra.mxu0 %v3246_v55  ;;  %1495 = vmatpush1.msra.mxu1 %v3247_v51 }
 0x645   :  { %1425 = vmatprep.subr.mxu0 %v3248_v49  ;;  %1496 = vmatprep.subr.mxu1 %v3249_v50 }
 0x646   :  { %1426 = vmatpush1.msra.mxu0 %v3250_v52  ;;  %1497 = vmatpush1.msra.mxu1 %v3251_v56 }
 0x647   :  { %1427 = vmatprep.subr.mxu0 %v3252_v6  ;;  %1498 = vmatprep.subr.mxu1 %v3253_v1 }
 0x648   :  { %1428 = vmatpush1.msra.mxu0 %v3254_v58  ;;  %1461 = vmatprep.mubr.f32.mxu0 %v3255_v63 }
 0x649   :  { %1499 = vmatpush1.msra.mxu1 %v3256_v59  ;;  %1532 = vmatprep.mubr.f32.mxu1 %v3255_v63 }
 0x6e9   :  { %v1276_v42 = vpop.f32.mrf.mxu0  ;;  %v1347_v46 = vpop.f32.mrf.mxu1 }
 0x6eb   :  { %v1278_v48 = vpop.f32.mrf.mxu0  ;;  %v1349_v0 = vpop.f32.mrf.mxu1 }
 0x6ec   :  { %v1356_v2 = vcombine.low %v1276_v42, %v1278_v48  ;;  %v1357_v3 = vcombine.low %v1347_v46, %v1349_v0 }
 0x6ee   :  { %v1364_v4 = vrot.slane %v1356_v2, %v3184_v62  ;;  %v1371_v5 = vrot.slane %v1357_v3, %v3184_v62 }
 0x6f0   :  { %v1372_v8 = vcombine.low %v1364_v4, %v1371_v5 }
 0x6f2   :  { %v1374_v9 = vadd.f32 %v1629_v7, %v1372_v8 }
 0x6f4   :  { %v1630_v10 = vmul.f32 -1.442695, %v1374_v9  ;;  %v1382_v13 = vrot.slane %v1374_v9, 6 }
 0x6f6   :  { %1685 = vpow2.f32 %v1630_v10 }
 0x703   :  { %v1686_v11 = vpop.eup %1685 }
 0x704   :  { %v1378_v12 = vadd.f32 1.0, %v1686_v11 }
 0x706   :  { %1687 = vrcp.f32 %v1378_v12 }
 0x707   :  { %1689 = vtanh.f32 %v1382_v13 }
 0x713   :  { %v1688_v14 = vpop.eup %1687 }
 0x714   :  { %v1386_v15 = vrot.slane %v1688_v14, 2  ;;  %v1690_v16 = vpop.eup %1689  ;;  %v1392_v22 = vrot.slane %v1688_v14, 4 }
 0x715   :  { %v1389_v17 = vmul.f32 %v1690_v16, %v1688_v14 }
 0x716   :  { %v1388_v53 = vmul.f32 %v1386_v15, %v2991_v38 }
 0x718   :  { %v1390_v19 = vadd.f32 %v1389_v17, %v1388_v53 }
 0x71a   :  { %1691 = vtanh.f32 %v1390_v19 }
 0x727   :  { %v1692_v23 = vpop.eup %1691 }
 0x728   :  { %v1394_v24 = vmul.f32 %v1692_v23, %v1392_v22 }
 0x72a   :  { %1462 = vmatmul.mubr.f32.vlgmr.msra.gmra.mxu0 %v1394_v24  ;;  %1533 = vmatmul.mubr.f32.vlgmr.msra.gmra.mxu1 %v1394_v24 }
 0x7ea   :  { %v1463_v25 = vpop.f32.mrf.mxu0  ;;  %v1534_v26 = vpop.f32.mrf.mxu1 }
 0x7ec   :  { %v1465_v27 = vpop.f32.mrf.mxu0  ;;  %v1536_v28 = vpop.f32.mrf.mxu1 }
 0x7ed   :  { %v1543_v29 = vcombine.low %v1463_v25, %v1465_v27  ;;  %v1544_v30 = vcombine.low %v1534_v26, %v1536_v28 }
 0x7ef   :  { %v1551_v31 = vrot.slane %v1543_v29, %v3184_v62  ;;  %v1558_v32 = vrot.slane %v1544_v30, %v3184_v62 }
 0x7f1   :  { %v1559_v34 = vcombine.low %v1551_v31, %v1558_v32 }
 0x7f3   :  { %v1561_v37 = vadd.f32 %v1631_v33, %v1559_v34 }
 0x7f5   :  { %v1632_v45 = vmul.f32 -1.442695, %v1561_v37  ;;  %v1569_v40 = vrot.slane %v1561_v37, 6 }
 0x7f7   :  { %1693 = vpow2.f32 %v1632_v45 }
 0x804   :  { %v1694_v20 = vpop.eup %1693 }
 0x805   :  { %v1565_v21 = vadd.f32 1.0, %v1694_v20 }
 0x807   :  { %1695 = vrcp.f32 %v1565_v21 }
 0x808   :  { %1697 = vtanh.f32 %v1569_v40 }
 0x814   :  { %v1696_v39 = vpop.eup %1695 }
 0x815   :  { %v1573_v41 = vrot.slane %v1696_v39, 2  ;;  %v1698_v43 = vpop.eup %1697 }
 0x816   :  { %v1576_v62 = vmul.f32 %v1698_v43, %v1696_v39 }
 0x817   :  { %v1575_v38 = vmul.f32 %v1573_v41, %v1390_v19 }
 0x819   :  { %v1577_v44 = vadd.f32 %v1576_v62, %v1575_v38 }
 0x81b   :  { %1699 = vtanh.f32 %v1577_v44  ;;  %1583 = vst [vmem:[#allocation3] sm:$0x3] %v1577_v44  ;;  %1589 = vst.msk [vmem:[#allocation6] sm:$0x3] %vm1587_vm0, %v1577_v44 }
 0x81c   :  { %1776 = shalt.err (!%p1773_p4)
}
 0x81d   :  { %1609 = dma.vmem_to_hbm [thread:$0]  %s1607_s14, 32, %s3080_s3, [#allocation7]   ;;  %v1579_v36 = vrot.slane %v1696_v39, 4 }
 0x81e   :  { %s1812_s17 = smov [#allocation4]  }
 0x81f   :  { %s1596_s18 = sshll.u32 %s1812_s17, 4  ;;  %s1597_s18 = int_to_ptr.vmem [resolvable:$true] %s1596_s18 }
 0x820   :  { %s1785_s19 = scalar_lea.vmem %s1597_s18, 32  ;;  %p1790_p6 = scmp.lt.s32.totalorder %s1597_s18, %s1597_s18 }
 0x821   :  { %p1786_p5 = scmp.ne.s32.totalorder %s1597_s18, %s1785_s19  ;;  %p1791_p7 = scmp.lt.s32.totalorder %s1785_s19, %s1785_s19 }
 0x823   :  { %p1792_p8 = por %p1791_p7, %p1790_p6 }
 0x825   :  { %p1793_p9 = pnand %p1792_p8, %p1786_p5 }
 0x828   :  { %v1700_v35 = vpop.eup %1699 }
 0x829   :  { %v1581_v18 = vmul.f32 %v1700_v35, %v1579_v36 }
 0x82b   :  { %1582 = vst [vmem:[#allocation2] sm:$0x3] %v1581_v18  ;;  %1588 = vst.msk [vmem:[#allocation4] sm:$0x3] %vm1587_vm0, %v1581_v18 }
 0x82c   :  { %1796 = shalt.err (!%p1793_p9)
}
 0x82d   :  { %1599 = dma.vmem_to_hbm [thread:$0]  %s1597_s18, 32, %s3079_s2, [#allocation5]  }
 0x82e   :  { %1805 = dma.done.wait [#allocation5], 32  }
 0x82f   :  { %1806 = vsyncadd [#allocation5], 4294967264 }
 0x830   :  { %1807 = dma.done.wait [#allocation7], 32  }
 0x831   :  { %1808 = vsyncadd [#allocation7], 4294967264 }
 0x832   :  { %1616 = vsyncpa [#allocation5], 1 }
 0x833   :  { %1617 = vsyncpa [#allocation7], 1 }

</bundles_post_ra>
